<compile_context>
chip_gen: v6e
topology: v6e:2x2x1
jax: 0.10.0
libtpu: 0.0.40
codegen_flags: <defaults>
</compile_context>

<pallas_src>
import numpy as np
import jax
import jax.numpy as jnp
from jax.experimental import pallas as pl
from jax.experimental.pallas import tpu as pltpu


# ---------------------------------------------------------------------------
# Parameter preparation (weight repacking, done once outside the kernel)
# ---------------------------------------------------------------------------
def conv_to_banded(conv_w, fsize):
    """conv_w: (Cout, Cin, 3, 3) -> (3, Cin*F, Cout*F) banded block matrices.

    M[dy, ci*F + g, co*F + f] = conv_w[co, ci, dy, g - f + 1] if |g - f| <= 1 else 0,
    so conv3x3(x)[co, t, f] = sum_dy (row t+dy of the T-halo lane-dense input) @ M[dy].
    The band is built per (F, F) channel block, so column zero-padding is implicit.
    """
    cout, cin = conv_w.shape[0], conv_w.shape[1]
    g = jnp.arange(fsize)[:, None]
    f = jnp.arange(fsize)[None, :]
    dx = g - f + 1                                   # (F, F)
    valid = (dx >= 0) & (dx <= 2)
    dxc = jnp.clip(dx, 0, 2)
    mats = []
    for dy in range(3):
        w_dy = conv_w[:, :, dy, :]                   # (Cout, Cin, 3)
        band = jnp.where(valid[None, None], w_dy[:, :, dxc], 0.0)   # (Cout, Cin, F, F)
        m = jnp.transpose(band, (1, 2, 0, 3)).reshape(cin * fsize, cout * fsize)
        mats.append(m)
    return jnp.stack(mats, axis=0).astype(jnp.float32)


def make_pool_matrix(cout, fsize):
    """(Cout*F, Cout*(F//2)) block-diagonal matrix implementing avg_pool2d((1, 2))."""
    fp = fsize // 2
    r = jnp.arange(cout * fsize)[:, None]
    c = jnp.arange(cout * fp)[None, :]
    same_ch = (r // fsize) == (c // fp)
    pair = ((r % fsize) // 2) == (c % fp)
    return jnp.where(same_ch & pair, 0.5, 0.0).astype(jnp.float32)


def prepare_kernel_params(params, eps=1e-5):
    shapes = params['shapes']
    nblk = len(shapes)
    kp = {'conv_m': [], 'bn_scale_v': [], 'bn_shift_v': [],
          'wgT': [], 'bgv': [], 'wbT': [], 'bbv': [], 'pool_m': []}
    kp['bn0'] = jnp.stack([params['bn0_gamma'] / jnp.sqrt(1.0 + eps),
                           params['bn0_beta']]).astype(jnp.float32)
    for i, (_, cout, fsize) in enumerate(shapes):
        kp['conv_m'].append(conv_to_banded(params['conv_w'][i], fsize))
        scale = params['bn_gamma'][i] / jnp.sqrt(1.0 + eps)          # eval-mode BN folded
        kp['bn_scale_v'].append(jnp.repeat(scale, fsize)[None, :].astype(jnp.float32))
        kp['bn_shift_v'].append(jnp.repeat(params['bn_beta'][i], fsize)[None, :]
                                .astype(jnp.float32))
        kp['wgT'].append(jnp.transpose(params['wg'][i]).astype(jnp.float32))   # (cond, C*F)
        kp['bgv'].append(params['bg'][i].reshape(1, -1).astype(jnp.float32))
        kp['wbT'].append(jnp.transpose(params['wb'][i]).astype(jnp.float32))
        kp['bbv'].append(params['bb'][i].reshape(1, -1).astype(jnp.float32))
        if i < nblk - 1:
            kp['pool_m'].append(make_pool_matrix(cout, fsize))
    return kp


# ---------------------------------------------------------------------------
# Fused encoder kernel: all blocks, one batch element per grid step
# ---------------------------------------------------------------------------
def make_encoder_kernel(shapes, T):
    nblk = len(shapes)

    def kernel(*refs):
        it = iter(refs)
        x_ref, cond_ref, bn0_ref = next(it), next(it), next(it)
        blocks = []
        for i in range(nblk):
            m_ref, sc_ref, sh_ref = next(it), next(it), next(it)
            wg_ref, bg_ref, wb_ref, bb_ref = next(it), next(it), next(it), next(it)
            p_ref = next(it) if i < nblk - 1 else None
            blocks.append((m_ref, sc_ref, sh_ref, wg_ref, bg_ref, wb_ref, bb_ref, p_ref))
        out_refs = [next(it) for _ in range(nblk)]
        pad_refs = [next(it) for _ in range(nblk)]

        c = cond_ref[0]                                   # (T, cond_dim)

        # Block-0 input: bn0 (eval affine) applied while filling the T-halo scratch.
        pad0 = pad_refs[0]
        pad0[...] = jnp.zeros_like(pad0)
        pad0[1:T + 1, :] = x_ref[0] * bn0_ref[0] + bn0_ref[1]

        for i in range(nblk):
            m_ref, sc_ref, sh_ref, wg_ref, bg_ref, wb_ref, bb_ref, p_ref = blocks[i]
            pad = pad_refs[i]

            # 3x3 "same" conv == 3 banded matmuls over lane-dense (T, Cin*F) slabs.
            acc = jnp.dot(pad[0:T, :], m_ref[0], preferred_element_type=jnp.float32)
            acc = acc + jnp.dot(pad[1:T + 1, :], m_ref[1],
                                preferred_element_type=jnp.float32)
            acc = acc + jnp.dot(pad[2:T + 2, :], m_ref[2],
                                preferred_element_type=jnp.float32)

            # BatchNorm (eval, folded per-channel scale/shift) + ReLU.
            y = jnp.maximum(acc * sc_ref[...] + sh_ref[...], 0.0)

            # FiLM: gamma/beta = 1x1 Conv1d of the condition, computed in-kernel and
            # already lane-dense (T, C*F) -- no materialized full-size gamma/beta.
            gamma = jnp.dot(c, wg_ref[...], preferred_element_type=jnp.float32) + bg_ref[...]
            beta = jnp.dot(c, wb_ref[...], preferred_element_type=jnp.float32) + bb_ref[...]
            y = y * gamma + beta

            out_refs[i][0] = y                            # single lane-dense (T, C*F) store

            if i + 1 < nblk:
                # avg_pool2d((1,2)) as one block-diagonal matmul; result goes straight
                # into the next block's VMEM scratch (intermediate never touches HBM).
                pooled = jnp.dot(y, p_ref[...], preferred_element_type=jnp.float32)
                pad_next = pad_refs[i + 1]
                pad_next[...] = jnp.zeros_like(pad_next)
                pad_next[1:T + 1, :] = pooled

    return kernel


def encoder_forward(kparams, shapes, x, cond):
    B, cin0, T, f0 = x.shape
    nblk = len(shapes)
    cond_dim = cond.shape[1]
    Ks = [c_in * f for (c_in, _, f) in shapes]
    CFs = [c_out * f for (_, c_out, f) in shapes]

    # Layout plumbing (tiny): NCHW -> lane-dense (B, T, Cin*F); condition -> (B, T, cond).
    x_dense = jnp.transpose(x, (0, 2, 1, 3)).reshape(B, T, cin0 * f0)
    cond_t = jnp.transpose(cond, (0, 2, 1))

    inputs = [x_dense, cond_t, kparams['bn0']]
    in_specs = [
        pl.BlockSpec((1, T, Ks[0]), lambda b: (b, 0, 0)),
        pl.BlockSpec((1, T, cond_dim), lambda b: (b, 0, 0)),
        pl.BlockSpec(memory_space=pltpu.MemorySpace.SMEM),
    ]
    for i in range(nblk):
        K, CF = Ks[i], CFs[i]
        inputs += [kparams['conv_m'][i], kparams['bn_scale_v'][i], kparams['bn_shift_v'][i],
                   kparams['wgT'][i], kparams['bgv'][i], kparams['wbT'][i], kparams['bbv'][i]]
        in_specs += [
            pl.BlockSpec((3, K, CF), lambda b: (0, 0, 0)),
            pl.BlockSpec((1, CF), lambda b: (0, 0)),
            pl.BlockSpec((1, CF), lambda b: (0, 0)),
            pl.BlockSpec((cond_dim, CF), lambda b: (0, 0)),
            pl.BlockSpec((1, CF), lambda b: (0, 0)),
            pl.BlockSpec((cond_dim, CF), lambda b: (0, 0)),
            pl.BlockSpec((1, CF), lambda b: (0, 0)),
        ]
        if i < nblk - 1:
            inputs.append(kparams['pool_m'][i])
            in_specs.append(pl.BlockSpec((CF, Ks[i + 1]), lambda b: (0, 0)))

    out_shape = tuple(jax.ShapeDtypeStruct((B, T, CFs[i]), jnp.float32) for i in range(nblk))
    out_specs = tuple(pl.BlockSpec((1, T, CFs[i]), lambda b: (b, 0, 0)) for i in range(nblk))
    scratch_shapes = [pltpu.VMEM((T + 2, Ks[i]), jnp.float32) for i in range(nblk)]

    dense_outs = pl.pallas_call(
        make_encoder_kernel(shapes, T),
        grid=(B,),
        in_specs=in_specs,
        out_specs=out_specs,
        out_shape=out_shape,
        scratch_shapes=scratch_shapes,
        compiler_params=pltpu.CompilerParams(dimension_semantics=("parallel",)),
    )(*inputs)

    # Back to the PyTorch NCHW layout (B, C, T, F) -- tiny layout plumbing on outputs.
    outs = []
    for i in range(nblk):
        _, cout, fsize = shapes[i]
        outs.append(dense_outs[i].reshape(B, T, cout, fsize).transpose(0, 2, 1, 3))
    return outs[-1], outs[:-1]


# ---------------------------------------------------------------------------
# Parameter init (deterministic, mirrors the shapes in Encoder.__init__)
# ---------------------------------------------------------------------------
def init_params(config, key):
    nb = config['num_blocks']
    keys = jax.random.split(key, 2 + 7 * (nb + 1))
    kit = iter(keys)
    params = {'conv_w': [], 'bn_gamma': [], 'bn_beta': [],
              'wg': [], 'bg': [], 'wb': [], 'bb': [], 'shapes': []}
    params['bn0_gamma'] = 1.0 + 0.1 * jax.random.normal(next(kit), (), jnp.float32)
    params['bn0_beta'] = 0.1 * jax.random.normal(next(kit), (), jnp.float32)

    in_ch = config['in_channels']
    out_ch = 2
    fsize = config['input_size']
    cond_dim = config['cond_dim']
    for _ in range(nb + 1):
        cf = out_ch * fsize
        params['conv_w'].append(
            0.2 * jax.random.normal(next(kit), (out_ch, in_ch, 3, 3), jnp.float32))
        params['bn_gamma'].append(1.0 + 0.1 * jax.random.normal(next(kit), (out_ch,), jnp.float32))
        params['bn_beta'].append(0.1 * jax.random.normal(next(kit), (out_ch,), jnp.float32))
        params['wg'].append(0.1 * jax.random.normal(next(kit), (cf, cond_dim), jnp.float32))
        params['bg'].append(1.0 + 0.05 * jax.random.normal(next(kit), (cf, 1), jnp.float32))
        params['wb'].append(0.1 * jax.random.normal(next(kit), (cf, cond_dim), jnp.float32))
        params['bb'].append(0.05 * jax.random.normal(next(kit), (cf, 1), jnp.float32))
        params['shapes'].append((in_ch, out_ch, fsize))
        in_ch = out_ch
        out_ch *= 2
        fsize //= 2
    return params


# ---------------------------------------------------------------------------
# Pure-JAX reference for correctness checking
# ---------------------------------------------------------------------------
def reference_forward(params, x, cond, num_blocks, eps=1e-5):
    x = x * (params['bn0_gamma'] / jnp.sqrt(1.0 + eps)) + params['bn0_beta']
    B = x.shape[0]
    concat_tensors = []
    for i in range(num_blocks + 1):
        _, cout, fsize = params['shapes'][i]
        x = jax.lax.conv_general_dilated(
            x, params['conv_w'][i], window_strides=(1, 1), padding=((1, 1), (1, 1)),
            dimension_numbers=('NCHW', 'OIHW', 'NCHW'),
            precision=jax.lax.Precision.HIGHEST)
        scale = params['bn_gamma'][i] / jnp.sqrt(1.0 + eps)
        x = x * scale[None, :, None, None] + params['bn_beta'][i][None, :, None, None]
        x = jnp.maximum(x, 0.0)
        gflat = jnp.einsum('oc,bct->bot', params['wg'][i], cond,
                           precision=jax.lax.Precision.HIGHEST) + params['bg'][i][None]
        bflat = jnp.einsum('oc,bct->bot', params['wb'][i], cond,
                           precision=jax.lax.Precision.HIGHEST) + params['bb'][i][None]
        g = gflat.reshape(B, cout, fsize, -1).transpose(0, 1, 3, 2)
        b_ = bflat.reshape(B, cout, fsize, -1).transpose(0, 1, 3, 2)
        x = x * g + b_
        if i < num_blocks:
            concat_tensors.append(x)
            Bx, Cx, Tx, Fx = x.shape
            x = x.reshape(Bx, Cx, Tx, Fx // 2, 2).mean(axis=-1)
    return x, concat_tensors


if __name__ == "__main__":
    config = {'in_channels': 1, 'momentum': 0.01, 'cond_dim': 4,
              'input_size': 16, 'num_blocks': 2}
    B, T = 2, 8

    master = jax.random.PRNGKey(0)
    kx, kc, kp = jax.random.split(master, 3)
    x = jax.random.normal(kx, (B, config['in_channels'], T, config['input_size']), jnp.float32)
    cond = jax.random.normal(kc, (B, config['cond_dim'], T), jnp.float32)

    params = init_params(config, kp)
    kparams = prepare_kernel_params(params)

    out, concat = encoder_forward(kparams, params['shapes'], x, cond)
    out = jax.block_until_ready(out)
    concat = [jax.block_until_ready(c) for c in concat]

    ref_out, ref_concat = reference_forward(params, x, cond, config['num_blocks'])
    np.testing.assert_allclose(np.asarray(out), np.asarray(ref_out), rtol=2e-2, atol=5e-3)
    for a, r in zip(concat, ref_concat):
        np.testing.assert_allclose(np.asarray(a), np.asarray(r), rtol=2e-2, atol=5e-3)

    print("KERNEL_OK")
</pallas_src>

<mosaic_0001>
module attributes {stable_mosaic.version = 11 : i64} {
  func.func @kernel(%arg0: i32, %arg1: memref<1x8x16xf32, #tpu.memory_space<vmem>>, %arg2: memref<1x8x4xf32, #tpu.memory_space<vmem>>, %arg3: memref<2xf32, #tpu.memory_space<smem>>, %arg4: memref<3x16x32xf32, #tpu.memory_space<vmem>>, %arg5: memref<1x32xf32, #tpu.memory_space<vmem>>, %arg6: memref<1x32xf32, #tpu.memory_space<vmem>>, %arg7: memref<4x32xf32, #tpu.memory_space<vmem>>, %arg8: memref<1x32xf32, #tpu.memory_space<vmem>>, %arg9: memref<4x32xf32, #tpu.memory_space<vmem>>, %arg10: memref<1x32xf32, #tpu.memory_space<vmem>>, %arg11: memref<32x16xf32, #tpu.memory_space<vmem>>, %arg12: memref<3x16x32xf32, #tpu.memory_space<vmem>>, %arg13: memref<1x32xf32, #tpu.memory_space<vmem>>, %arg14: memref<1x32xf32, #tpu.memory_space<vmem>>, %arg15: memref<4x32xf32, #tpu.memory_space<vmem>>, %arg16: memref<1x32xf32, #tpu.memory_space<vmem>>, %arg17: memref<4x32xf32, #tpu.memory_space<vmem>>, %arg18: memref<1x32xf32, #tpu.memory_space<vmem>>, %arg19: memref<32x16xf32, #tpu.memory_space<vmem>>, %arg20: memref<3x16x32xf32, #tpu.memory_space<vmem>>, %arg21: memref<1x32xf32, #tpu.memory_space<vmem>>, %arg22: memref<1x32xf32, #tpu.memory_space<vmem>>, %arg23: memref<4x32xf32, #tpu.memory_space<vmem>>, %arg24: memref<1x32xf32, #tpu.memory_space<vmem>>, %arg25: memref<4x32xf32, #tpu.memory_space<vmem>>, %arg26: memref<1x32xf32, #tpu.memory_space<vmem>>, %arg27: memref<1x8x32xf32, #tpu.memory_space<vmem>>, %arg28: memref<1x8x32xf32, #tpu.memory_space<vmem>>, %arg29: memref<1x8x32xf32, #tpu.memory_space<vmem>>, %arg30: memref<10x16xf32, #tpu.memory_space<vmem>>, %arg31: memref<10x16xf32, #tpu.memory_space<vmem>>, %arg32: memref<10x16xf32, #tpu.memory_space<vmem>>) attributes {dimension_semantics = [#tpu.dimension_semantics<parallel>], iteration_bounds = array<i64: 2>, scalar_prefetch = 0 : i64, scratch_operands = 3 : i64, tpu.core_type = #tpu.core_type<tc>, window_params = [{transform_indices = @transform_0, window_bounds = array<i64: 1, 8, 16>}, {transform_indices = @transform_1, window_bounds = array<i64: 1, 8, 4>}, {transform_indices = @transform_2, window_bounds = array<i64: 2>}, {pipeline_mode = #tpu.pipeline_mode<synchronous>, transform_indices = @transform_3, window_bounds = array<i64: 3, 16, 32>}, {pipeline_mode = #tpu.pipeline_mode<synchronous>, transform_indices = @transform_4, window_bounds = array<i64: 1, 32>}, {pipeline_mode = #tpu.pipeline_mode<synchronous>, transform_indices = @transform_5, window_bounds = array<i64: 1, 32>}, {pipeline_mode = #tpu.pipeline_mode<synchronous>, transform_indices = @transform_6, window_bounds = array<i64: 4, 32>}, {pipeline_mode = #tpu.pipeline_mode<synchronous>, transform_indices = @transform_7, window_bounds = array<i64: 1, 32>}, {pipeline_mode = #tpu.pipeline_mode<synchronous>, transform_indices = @transform_8, window_bounds = array<i64: 4, 32>}, {pipeline_mode = #tpu.pipeline_mode<synchronous>, transform_indices = @transform_9, window_bounds = array<i64: 1, 32>}, {pipeline_mode = #tpu.pipeline_mode<synchronous>, transform_indices = @transform_10, window_bounds = array<i64: 32, 16>}, {pipeline_mode = #tpu.pipeline_mode<synchronous>, transform_indices = @transform_11, window_bounds = array<i64: 3, 16, 32>}, {pipeline_mode = #tpu.pipeline_mode<synchronous>, transform_indices = @transform_12, window_bounds = array<i64: 1, 32>}, {pipeline_mode = #tpu.pipeline_mode<synchronous>, transform_indices = @transform_13, window_bounds = array<i64: 1, 32>}, {pipeline_mode = #tpu.pipeline_mode<synchronous>, transform_indices = @transform_14, window_bounds = array<i64: 4, 32>}, {pipeline_mode = #tpu.pipeline_mode<synchronous>, transform_indices = @transform_15, window_bounds = array<i64: 1, 32>}, {pipeline_mode = #tpu.pipeline_mode<synchronous>, transform_indices = @transform_16, window_bounds = array<i64: 4, 32>}, {pipeline_mode = #tpu.pipeline_mode<synchronous>, transform_indices = @transform_17, window_bounds = array<i64: 1, 32>}, {pipeline_mode = #tpu.pipeline_mode<synchronous>, transform_indices = @transform_18, window_bounds = array<i64: 32, 16>}, {pipeline_mode = #tpu.pipeline_mode<synchronous>, transform_indices = @transform_19, window_bounds = array<i64: 3, 16, 32>}, {pipeline_mode = #tpu.pipeline_mode<synchronous>, transform_indices = @transform_20, window_bounds = array<i64: 1, 32>}, {pipeline_mode = #tpu.pipeline_mode<synchronous>, transform_indices = @transform_21, window_bounds = array<i64: 1, 32>}, {pipeline_mode = #tpu.pipeline_mode<synchronous>, transform_indices = @transform_22, window_bounds = array<i64: 4, 32>}, {pipeline_mode = #tpu.pipeline_mode<synchronous>, transform_indices = @transform_23, window_bounds = array<i64: 1, 32>}, {pipeline_mode = #tpu.pipeline_mode<synchronous>, transform_indices = @transform_24, window_bounds = array<i64: 4, 32>}, {pipeline_mode = #tpu.pipeline_mode<synchronous>, transform_indices = @transform_25, window_bounds = array<i64: 1, 32>}, {transform_indices = @transform_26, window_bounds = array<i64: 1, 8, 32>}, {transform_indices = @transform_27, window_bounds = array<i64: 1, 8, 32>}, {transform_indices = @transform_28, window_bounds = array<i64: 1, 8, 32>}]} {
    %c0 = arith.constant 0 : index
    %c0_0 = arith.constant 0 : index
    %c0_1 = arith.constant 0 : index
    %0 = vector.load %arg2[%c0, %c0_0, %c0_1] : memref<1x8x4xf32, #tpu.memory_space<vmem>>, vector<1x8x4xf32>
    %1 = vector.shape_cast %0 : vector<1x8x4xf32> to vector<8x4xf32>
    %cst = arith.constant 0.000000e+00 : f32
    %2 = vector.broadcast %cst : f32 to vector<10x16xf32>
    %c0_2 = arith.constant 0 : index
    %c0_3 = arith.constant 0 : index
    %3 = vector.load %arg30[%c0_2, %c0_3] : memref<10x16xf32, #tpu.memory_space<vmem>>, vector<10x16xf32>
    tpu.vector_store %arg30[%c0_2, %c0_3], %2 {strides = array<i32>} : memref<10x16xf32, #tpu.memory_space<vmem>>, vector<10x16xf32>,
    %c0_4 = arith.constant 0 : index
    %c0_5 = arith.constant 0 : index
    %c0_6 = arith.constant 0 : index
    %4 = vector.load %arg1[%c0_4, %c0_5, %c0_6] : memref<1x8x16xf32, #tpu.memory_space<vmem>>, vector<1x8x16xf32>
    %5 = vector.shape_cast %4 : vector<1x8x16xf32> to vector<8x16xf32>
    %c0_7 = arith.constant 0 : index
    %6 = memref.load %arg3[%c0_7] : memref<2xf32, #tpu.memory_space<smem>>
    %7 = vector.broadcast %6 : f32 to vector<8x16xf32>
    %8 = arith.mulf %5, %7 : vector<8x16xf32>
    %c1 = arith.constant 1 : index
    %9 = memref.load %arg3[%c1] : memref<2xf32, #tpu.memory_space<smem>>
    %10 = vector.broadcast %9 : f32 to vector<8x16xf32>
    %11 = arith.addf %8, %10 : vector<8x16xf32>
    %c1_8 = arith.constant 1 : index
    %c0_9 = arith.constant 0 : index
    %12 = vector.load %arg30[%c1_8, %c0_9] : memref<10x16xf32, #tpu.memory_space<vmem>>, vector<8x16xf32>
    tpu.vector_store %arg30[%c1_8, %c0_9], %11 {strides = array<i32>} : memref<10x16xf32, #tpu.memory_space<vmem>>, vector<8x16xf32>,
    %c0_10 = arith.constant 0 : index
    %c0_11 = arith.constant 0 : index
    %13 = vector.load %arg30[%c0_10, %c0_11] : memref<10x16xf32, #tpu.memory_space<vmem>>, vector<8x16xf32>
    %c0_12 = arith.constant 0 : index
    %c0_13 = arith.constant 0 : index
    %c0_14 = arith.constant 0 : index
    %14 = vector.load %arg4[%c0_12, %c0_13, %c0_14] : memref<3x16x32xf32, #tpu.memory_space<vmem>>, vector<1x16x32xf32>
    %15 = vector.shape_cast %14 : vector<1x16x32xf32> to vector<16x32xf32>
    %cst_15 = arith.constant dense<0.000000e+00> : vector<8x32xf32>
    %16 = tpu.matmul %13, %15, %cst_15 {dimension_numbers = #tpu.dot_dimension_numbers<[1], [0], [0], [1], [0, 0, 1, 1], [], []>} : vector<8x16xf32>, vector<16x32xf32>, vector<8x32xf32> -> vector<8x32xf32>
    %c1_16 = arith.constant 1 : index
    %c0_17 = arith.constant 0 : index
    %17 = vector.load %arg30[%c1_16, %c0_17] : memref<10x16xf32, #tpu.memory_space<vmem>>, vector<8x16xf32>
    %c1_18 = arith.constant 1 : index
    %c0_19 = arith.constant 0 : index
    %c0_20 = arith.constant 0 : index
    %18 = vector.load %arg4[%c1_18, %c0_19, %c0_20] : memref<3x16x32xf32, #tpu.memory_space<vmem>>, vector<1x16x32xf32>
    %19 = vector.shape_cast %18 : vector<1x16x32xf32> to vector<16x32xf32>
    %cst_21 = arith.constant dense<0.000000e+00> : vector<8x32xf32>
    %20 = tpu.matmul %17, %19, %cst_21 {dimension_numbers = #tpu.dot_dimension_numbers<[1], [0], [0], [1], [0, 0, 1, 1], [], []>} : vector<8x16xf32>, vector<16x32xf32>, vector<8x32xf32> -> vector<8x32xf32>
    %21 = arith.addf %16, %20 : vector<8x32xf32>
    %c2 = arith.constant 2 : index
    %c0_22 = arith.constant 0 : index
    %22 = vector.load %arg30[%c2, %c0_22] : memref<10x16xf32, #tpu.memory_space<vmem>>, vector<8x16xf32>
    %c2_23 = arith.constant 2 : index
    %c0_24 = arith.constant 0 : index
    %c0_25 = arith.constant 0 : index
    %23 = vector.load %arg4[%c2_23, %c0_24, %c0_25] : memref<3x16x32xf32, #tpu.memory_space<vmem>>, vector<1x16x32xf32>
    %24 = vector.shape_cast %23 : vector<1x16x32xf32> to vector<16x32xf32>
    %cst_26 = arith.constant dense<0.000000e+00> : vector<8x32xf32>
    %25 = tpu.matmul %22, %24, %cst_26 {dimension_numbers = #tpu.dot_dimension_numbers<[1], [0], [0], [1], [0, 0, 1, 1], [], []>} : vector<8x16xf32>, vector<16x32xf32>, vector<8x32xf32> -> vector<8x32xf32>
    %26 = arith.addf %21, %25 : vector<8x32xf32>
    %c0_27 = arith.constant 0 : index
    %c0_28 = arith.constant 0 : index
    %27 = vector.load %arg5[%c0_27, %c0_28] : memref<1x32xf32, #tpu.memory_space<vmem>>, vector<1x32xf32>
    %28 = vector.broadcast %27 : vector<1x32xf32> to vector<8x32xf32>
    %29 = arith.mulf %26, %28 : vector<8x32xf32>
    %c0_29 = arith.constant 0 : index
    %c0_30 = arith.constant 0 : index
    %30 = vector.load %arg6[%c0_29, %c0_30] : memref<1x32xf32, #tpu.memory_space<vmem>>, vector<1x32xf32>
    %31 = vector.broadcast %30 : vector<1x32xf32> to vector<8x32xf32>
    %32 = arith.addf %29, %31 : vector<8x32xf32>
    %cst_31 = arith.constant 0.000000e+00 : f32
    %33 = vector.broadcast %cst_31 : f32 to vector<8x32xf32>
    %34 = arith.maximumf %32, %33 : vector<8x32xf32>
    %c0_32 = arith.constant 0 : index
    %c0_33 = arith.constant 0 : index
    %35 = vector.load %arg7[%c0_32, %c0_33] : memref<4x32xf32, #tpu.memory_space<vmem>>, vector<4x32xf32>
    %cst_34 = arith.constant dense<0.000000e+00> : vector<8x32xf32>
    %36 = tpu.matmul %1, %35, %cst_34 {dimension_numbers = #tpu.dot_dimension_numbers<[1], [0], [0], [1], [0, 0, 1, 1], [], []>} : vector<8x4xf32>, vector<4x32xf32>, vector<8x32xf32> -> vector<8x32xf32>
    %c0_35 = arith.constant 0 : index
    %c0_36 = arith.constant 0 : index
    %37 = vector.load %arg8[%c0_35, %c0_36] : memref<1x32xf32, #tpu.memory_space<vmem>>, vector<1x32xf32>
    %38 = vector.broadcast %37 : vector<1x32xf32> to vector<8x32xf32>
    %39 = arith.addf %36, %38 : vector<8x32xf32>
    %c0_37 = arith.constant 0 : index
    %c0_38 = arith.constant 0 : index
    %40 = vector.load %arg9[%c0_37, %c0_38] : memref<4x32xf32, #tpu.memory_space<vmem>>, vector<4x32xf32>
    %cst_39 = arith.constant dense<0.000000e+00> : vector<8x32xf32>
    %41 = tpu.matmul %1, %40, %cst_39 {dimension_numbers = #tpu.dot_dimension_numbers<[1], [0], [0], [1], [0, 0, 1, 1], [], []>} : vector<8x4xf32>, vector<4x32xf32>, vector<8x32xf32> -> vector<8x32xf32>
    %c0_40 = arith.constant 0 : index
    %c0_41 = arith.constant 0 : index
    %42 = vector.load %arg10[%c0_40, %c0_41] : memref<1x32xf32, #tpu.memory_space<vmem>>, vector<1x32xf32>
    %43 = vector.broadcast %42 : vector<1x32xf32> to vector<8x32xf32>
    %44 = arith.addf %41, %43 : vector<8x32xf32>
    %45 = arith.mulf %34, %39 : vector<8x32xf32>
    %46 = arith.addf %45, %44 : vector<8x32xf32>
    %c0_42 = arith.constant 0 : index
    %c0_43 = arith.constant 0 : index
    %c0_44 = arith.constant 0 : index
    %47 = vector.load %arg27[%c0_42, %c0_43, %c0_44] : memref<1x8x32xf32, #tpu.memory_space<vmem>>, vector<1x8x32xf32>
    %48 = vector.shape_cast %47 : vector<1x8x32xf32> to vector<8x32xf32>
    %49 = vector.shape_cast %46 : vector<8x32xf32> to vector<1x8x32xf32>
    tpu.vector_store %arg27[%c0_42, %c0_43, %c0_44], %49 {strides = array<i32>} : memref<1x8x32xf32, #tpu.memory_space<vmem>>, vector<1x8x32xf32>,
    %c0_45 = arith.constant 0 : index
    %c0_46 = arith.constant 0 : index
    %50 = vector.load %arg11[%c0_45, %c0_46] : memref<32x16xf32, #tpu.memory_space<vmem>>, vector<32x16xf32>
    %cst_47 = arith.constant dense<0.000000e+00> : vector<8x16xf32>
    %51 = tpu.matmul %46, %50, %cst_47 {dimension_numbers = #tpu.dot_dimension_numbers<[1], [0], [0], [1], [0, 0, 1, 1], [], []>} : vector<8x32xf32>, vector<32x16xf32>, vector<8x16xf32> -> vector<8x16xf32>
    %cst_48 = arith.constant 0.000000e+00 : f32
    %52 = vector.broadcast %cst_48 : f32 to vector<10x16xf32>
    %c0_49 = arith.constant 0 : index
    %c0_50 = arith.constant 0 : index
    %53 = vector.load %arg31[%c0_49, %c0_50] : memref<10x16xf32, #tpu.memory_space<vmem>>, vector<10x16xf32>
    tpu.vector_store %arg31[%c0_49, %c0_50], %52 {strides = array<i32>} : memref<10x16xf32, #tpu.memory_space<vmem>>, vector<10x16xf32>,
    %c1_51 = arith.constant 1 : index
    %c0_52 = arith.constant 0 : index
    %54 = vector.load %arg31[%c1_51, %c0_52] : memref<10x16xf32, #tpu.memory_space<vmem>>, vector<8x16xf32>
    tpu.vector_store %arg31[%c1_51, %c0_52], %51 {strides = array<i32>} : memref<10x16xf32, #tpu.memory_space<vmem>>, vector<8x16xf32>,
    %c0_53 = arith.constant 0 : index
    %c0_54 = arith.constant 0 : index
    %55 = vector.load %arg31[%c0_53, %c0_54] : memref<10x16xf32, #tpu.memory_space<vmem>>, vector<8x16xf32>
    %c0_55 = arith.constant 0 : index
    %c0_56 = arith.constant 0 : index
    %c0_57 = arith.constant 0 : index
    %56 = vector.load %arg12[%c0_55, %c0_56, %c0_57] : memref<3x16x32xf32, #tpu.memory_space<vmem>>, vector<1x16x32xf32>
    %57 = vector.shape_cast %56 : vector<1x16x32xf32> to vector<16x32xf32>
    %cst_58 = arith.constant dense<0.000000e+00> : vector<8x32xf32>
    %58 = tpu.matmul %55, %57, %cst_58 {dimension_numbers = #tpu.dot_dimension_numbers<[1], [0], [0], [1], [0, 0, 1, 1], [], []>} : vector<8x16xf32>, vector<16x32xf32>, vector<8x32xf32> -> vector<8x32xf32>
    %c1_59 = arith.constant 1 : index
    %c0_60 = arith.constant 0 : index
    %59 = vector.load %arg31[%c1_59, %c0_60] : memref<10x16xf32, #tpu.memory_space<vmem>>, vector<8x16xf32>
    %c1_61 = arith.constant 1 : index
    %c0_62 = arith.constant 0 : index
    %c0_63 = arith.constant 0 : index
    %60 = vector.load %arg12[%c1_61, %c0_62, %c0_63] : memref<3x16x32xf32, #tpu.memory_space<vmem>>, vector<1x16x32xf32>
    %61 = vector.shape_cast %60 : vector<1x16x32xf32> to vector<16x32xf32>
    %cst_64 = arith.constant dense<0.000000e+00> : vector<8x32xf32>
    %62 = tpu.matmul %59, %61, %cst_64 {dimension_numbers = #tpu.dot_dimension_numbers<[1], [0], [0], [1], [0, 0, 1, 1], [], []>} : vector<8x16xf32>, vector<16x32xf32>, vector<8x32xf32> -> vector<8x32xf32>
    %63 = arith.addf %58, %62 : vector<8x32xf32>
    %c2_65 = arith.constant 2 : index
    %c0_66 = arith.constant 0 : index
    %64 = vector.load %arg31[%c2_65, %c0_66] : memref<10x16xf32, #tpu.memory_space<vmem>>, vector<8x16xf32>
    %c2_67 = arith.constant 2 : index
    %c0_68 = arith.constant 0 : index
    %c0_69 = arith.constant 0 : index
    %65 = vector.load %arg12[%c2_67, %c0_68, %c0_69] : memref<3x16x32xf32, #tpu.memory_space<vmem>>, vector<1x16x32xf32>
    %66 = vector.shape_cast %65 : vector<1x16x32xf32> to vector<16x32xf32>
    %cst_70 = arith.constant dense<0.000000e+00> : vector<8x32xf32>
    %67 = tpu.matmul %64, %66, %cst_70 {dimension_numbers = #tpu.dot_dimension_numbers<[1], [0], [0], [1], [0, 0, 1, 1], [], []>} : vector<8x16xf32>, vector<16x32xf32>, vector<8x32xf32> -> vector<8x32xf32>
    %68 = arith.addf %63, %67 : vector<8x32xf32>
    %c0_71 = arith.constant 0 : index
    %c0_72 = arith.constant 0 : index
    %69 = vector.load %arg13[%c0_71, %c0_72] : memref<1x32xf32, #tpu.memory_space<vmem>>, vector<1x32xf32>
    %70 = vector.broadcast %69 : vector<1x32xf32> to vector<8x32xf32>
    %71 = arith.mulf %68, %70 : vector<8x32xf32>
    %c0_73 = arith.constant 0 : index
    %c0_74 = arith.constant 0 : index
    %72 = vector.load %arg14[%c0_73, %c0_74] : memref<1x32xf32, #tpu.memory_space<vmem>>, vector<1x32xf32>
    %73 = vector.broadcast %72 : vector<1x32xf32> to vector<8x32xf32>
    %74 = arith.addf %71, %73 : vector<8x32xf32>
    %cst_75 = arith.constant 0.000000e+00 : f32
    %75 = vector.broadcast %cst_75 : f32 to vector<8x32xf32>
    %76 = arith.maximumf %74, %75 : vector<8x32xf32>
    %c0_76 = arith.constant 0 : index
    %c0_77 = arith.constant 0 : index
    %77 = vector.load %arg15[%c0_76, %c0_77] : memref<4x32xf32, #tpu.memory_space<vmem>>, vector<4x32xf32>
    %cst_78 = arith.constant dense<0.000000e+00> : vector<8x32xf32>
    %78 = tpu.matmul %1, %77, %cst_78 {dimension_numbers = #tpu.dot_dimension_numbers<[1], [0], [0], [1], [0, 0, 1, 1], [], []>} : vector<8x4xf32>, vector<4x32xf32>, vector<8x32xf32> -> vector<8x32xf32>
    %c0_79 = arith.constant 0 : index
    %c0_80 = arith.constant 0 : index
    %79 = vector.load %arg16[%c0_79, %c0_80] : memref<1x32xf32, #tpu.memory_space<vmem>>, vector<1x32xf32>
    %80 = vector.broadcast %79 : vector<1x32xf32> to vector<8x32xf32>
    %81 = arith.addf %78, %80 : vector<8x32xf32>
    %c0_81 = arith.constant 0 : index
    %c0_82 = arith.constant 0 : index
    %82 = vector.load %arg17[%c0_81, %c0_82] : memref<4x32xf32, #tpu.memory_space<vmem>>, vector<4x32xf32>
    %cst_83 = arith.constant dense<0.000000e+00> : vector<8x32xf32>
    %83 = tpu.matmul %1, %82, %cst_83 {dimension_numbers = #tpu.dot_dimension_numbers<[1], [0], [0], [1], [0, 0, 1, 1], [], []>} : vector<8x4xf32>, vector<4x32xf32>, vector<8x32xf32> -> vector<8x32xf32>
    %c0_84 = arith.constant 0 : index
    %c0_85 = arith.constant 0 : index
    %84 = vector.load %arg18[%c0_84, %c0_85] : memref<1x32xf32, #tpu.memory_space<vmem>>, vector<1x32xf32>
    %85 = vector.broadcast %84 : vector<1x32xf32> to vector<8x32xf32>
    %86 = arith.addf %83, %85 : vector<8x32xf32>
    %87 = arith.mulf %76, %81 : vector<8x32xf32>
    %88 = arith.addf %87, %86 : vector<8x32xf32>
    %c0_86 = arith.constant 0 : index
    %c0_87 = arith.constant 0 : index
    %c0_88 = arith.constant 0 : index
    %89 = vector.load %arg28[%c0_86, %c0_87, %c0_88] : memref<1x8x32xf32, #tpu.memory_space<vmem>>, vector<1x8x32xf32>
    %90 = vector.shape_cast %89 : vector<1x8x32xf32> to vector<8x32xf32>
    %91 = vector.shape_cast %88 : vector<8x32xf32> to vector<1x8x32xf32>
    tpu.vector_store %arg28[%c0_86, %c0_87, %c0_88], %91 {strides = array<i32>} : memref<1x8x32xf32, #tpu.memory_space<vmem>>, vector<1x8x32xf32>,
    %c0_89 = arith.constant 0 : index
    %c0_90 = arith.constant 0 : index
    %92 = vector.load %arg19[%c0_89, %c0_90] : memref<32x16xf32, #tpu.memory_space<vmem>>, vector<32x16xf32>
    %cst_91 = arith.constant dense<0.000000e+00> : vector<8x16xf32>
    %93 = tpu.matmul %88, %92, %cst_91 {dimension_numbers = #tpu.dot_dimension_numbers<[1], [0], [0], [1], [0, 0, 1, 1], [], []>} : vector<8x32xf32>, vector<32x16xf32>, vector<8x16xf32> -> vector<8x16xf32>
    %cst_92 = arith.constant 0.000000e+00 : f32
    %94 = vector.broadcast %cst_92 : f32 to vector<10x16xf32>
    %c0_93 = arith.constant 0 : index
    %c0_94 = arith.constant 0 : index
    %95 = vector.load %arg32[%c0_93, %c0_94] : memref<10x16xf32, #tpu.memory_space<vmem>>, vector<10x16xf32>
    tpu.vector_store %arg32[%c0_93, %c0_94], %94 {strides = array<i32>} : memref<10x16xf32, #tpu.memory_space<vmem>>, vector<10x16xf32>,
    %c1_95 = arith.constant 1 : index
    %c0_96 = arith.constant 0 : index
    %96 = vector.load %arg32[%c1_95, %c0_96] : memref<10x16xf32, #tpu.memory_space<vmem>>, vector<8x16xf32>
    tpu.vector_store %arg32[%c1_95, %c0_96], %93 {strides = array<i32>} : memref<10x16xf32, #tpu.memory_space<vmem>>, vector<8x16xf32>,
    %c0_97 = arith.constant 0 : index
    %c0_98 = arith.constant 0 : index
    %97 = vector.load %arg32[%c0_97, %c0_98] : memref<10x16xf32, #tpu.memory_space<vmem>>, vector<8x16xf32>
    %c0_99 = arith.constant 0 : index
    %c0_100 = arith.constant 0 : index
    %c0_101 = arith.constant 0 : index
    %98 = vector.load %arg20[%c0_99, %c0_100, %c0_101] : memref<3x16x32xf32, #tpu.memory_space<vmem>>, vector<1x16x32xf32>
    %99 = vector.shape_cast %98 : vector<1x16x32xf32> to vector<16x32xf32>
    %cst_102 = arith.constant dense<0.000000e+00> : vector<8x32xf32>
    %100 = tpu.matmul %97, %99, %cst_102 {dimension_numbers = #tpu.dot_dimension_numbers<[1], [0], [0], [1], [0, 0, 1, 1], [], []>} : vector<8x16xf32>, vector<16x32xf32>, vector<8x32xf32> -> vector<8x32xf32>
    %c1_103 = arith.constant 1 : index
    %c0_104 = arith.constant 0 : index
    %101 = vector.load %arg32[%c1_103, %c0_104] : memref<10x16xf32, #tpu.memory_space<vmem>>, vector<8x16xf32>
    %c1_105 = arith.constant 1 : index
    %c0_106 = arith.constant 0 : index
    %c0_107 = arith.constant 0 : index
    %102 = vector.load %arg20[%c1_105, %c0_106, %c0_107] : memref<3x16x32xf32, #tpu.memory_space<vmem>>, vector<1x16x32xf32>
    %103 = vector.shape_cast %102 : vector<1x16x32xf32> to vector<16x32xf32>
    %cst_108 = arith.constant dense<0.000000e+00> : vector<8x32xf32>
    %104 = tpu.matmul %101, %103, %cst_108 {dimension_numbers = #tpu.dot_dimension_numbers<[1], [0], [0], [1], [0, 0, 1, 1], [], []>} : vector<8x16xf32>, vector<16x32xf32>, vector<8x32xf32> -> vector<8x32xf32>
    %105 = arith.addf %100, %104 : vector<8x32xf32>
    %c2_109 = arith.constant 2 : index
    %c0_110 = arith.constant 0 : index
    %106 = vector.load %arg32[%c2_109, %c0_110] : memref<10x16xf32, #tpu.memory_space<vmem>>, vector<8x16xf32>
    %c2_111 = arith.constant 2 : index
    %c0_112 = arith.constant 0 : index
    %c0_113 = arith.constant 0 : index
    %107 = vector.load %arg20[%c2_111, %c0_112, %c0_113] : memref<3x16x32xf32, #tpu.memory_space<vmem>>, vector<1x16x32xf32>
    %108 = vector.shape_cast %107 : vector<1x16x32xf32> to vector<16x32xf32>
    %cst_114 = arith.constant dense<0.000000e+00> : vector<8x32xf32>
    %109 = tpu.matmul %106, %108, %cst_114 {dimension_numbers = #tpu.dot_dimension_numbers<[1], [0], [0], [1], [0, 0, 1, 1], [], []>} : vector<8x16xf32>, vector<16x32xf32>, vector<8x32xf32> -> vector<8x32xf32>
    %110 = arith.addf %105, %109 : vector<8x32xf32>
    %c0_115 = arith.constant 0 : index
    %c0_116 = arith.constant 0 : index
    %111 = vector.load %arg21[%c0_115, %c0_116] : memref<1x32xf32, #tpu.memory_space<vmem>>, vector<1x32xf32>
    %112 = vector.broadcast %111 : vector<1x32xf32> to vector<8x32xf32>
    %113 = arith.mulf %110, %112 : vector<8x32xf32>
    %c0_117 = arith.constant 0 : index
    %c0_118 = arith.constant 0 : index
    %114 = vector.load %arg22[%c0_117, %c0_118] : memref<1x32xf32, #tpu.memory_space<vmem>>, vector<1x32xf32>
    %115 = vector.broadcast %114 : vector<1x32xf32> to vector<8x32xf32>
    %116 = arith.addf %113, %115 : vector<8x32xf32>
    %cst_119 = arith.constant 0.000000e+00 : f32
    %117 = vector.broadcast %cst_119 : f32 to vector<8x32xf32>
    %118 = arith.maximumf %116, %117 : vector<8x32xf32>
    %c0_120 = arith.constant 0 : index
    %c0_121 = arith.constant 0 : index
    %119 = vector.load %arg23[%c0_120, %c0_121] : memref<4x32xf32, #tpu.memory_space<vmem>>, vector<4x32xf32>
    %cst_122 = arith.constant dense<0.000000e+00> : vector<8x32xf32>
    %120 = tpu.matmul %1, %119, %cst_122 {dimension_numbers = #tpu.dot_dimension_numbers<[1], [0], [0], [1], [0, 0, 1, 1], [], []>} : vector<8x4xf32>, vector<4x32xf32>, vector<8x32xf32> -> vector<8x32xf32>
    %c0_123 = arith.constant 0 : index
    %c0_124 = arith.constant 0 : index
    %121 = vector.load %arg24[%c0_123, %c0_124] : memref<1x32xf32, #tpu.memory_space<vmem>>, vector<1x32xf32>
    %122 = vector.broadcast %121 : vector<1x32xf32> to vector<8x32xf32>
    %123 = arith.addf %120, %122 : vector<8x32xf32>
    %c0_125 = arith.constant 0 : index
    %c0_126 = arith.constant 0 : index
    %124 = vector.load %arg25[%c0_125, %c0_126] : memref<4x32xf32, #tpu.memory_space<vmem>>, vector<4x32xf32>
    %cst_127 = arith.constant dense<0.000000e+00> : vector<8x32xf32>
    %125 = tpu.matmul %1, %124, %cst_127 {dimension_numbers = #tpu.dot_dimension_numbers<[1], [0], [0], [1], [0, 0, 1, 1], [], []>} : vector<8x4xf32>, vector<4x32xf32>, vector<8x32xf32> -> vector<8x32xf32>
    %c0_128 = arith.constant 0 : index
    %c0_129 = arith.constant 0 : index
    %126 = vector.load %arg26[%c0_128, %c0_129] : memref<1x32xf32, #tpu.memory_space<vmem>>, vector<1x32xf32>
    %127 = vector.broadcast %126 : vector<1x32xf32> to vector<8x32xf32>
    %128 = arith.addf %125, %127 : vector<8x32xf32>
    %129 = arith.mulf %118, %123 : vector<8x32xf32>
    %130 = arith.addf %129, %128 : vector<8x32xf32>
    %c0_130 = arith.constant 0 : index
    %c0_131 = arith.constant 0 : index
    %c0_132 = arith.constant 0 : index
    %131 = vector.load %arg29[%c0_130, %c0_131, %c0_132] : memref<1x8x32xf32, #tpu.memory_space<vmem>>, vector<1x8x32xf32>
    %132 = vector.shape_cast %131 : vector<1x8x32xf32> to vector<8x32xf32>
    %133 = vector.shape_cast %130 : vector<8x32xf32> to vector<1x8x32xf32>
    tpu.vector_store %arg29[%c0_130, %c0_131, %c0_132], %133 {strides = array<i32>} : memref<1x8x32xf32, #tpu.memory_space<vmem>>, vector<1x8x32xf32>,
    return
  }
  func.func @transform_0(%arg0: i32) -> (i32, i32, i32) {
    %c0_i32 = arith.constant 0 : i32
    %c0_i32_0 = arith.constant 0 : i32
    %c0_i32_1 = arith.constant 0 : i32
    return %arg0, %c0_i32, %c0_i32_0 : i32, i32, i32
  }
  func.func @transform_1(%arg0: i32) -> (i32, i32, i32) {
    %c0_i32 = arith.constant 0 : i32
    %c0_i32_0 = arith.constant 0 : i32
    %c0_i32_1 = arith.constant 0 : i32
    return %arg0, %c0_i32, %c0_i32_0 : i32, i32, i32
  }
  func.func @transform_2(%arg0: i32) -> i32 {
    %c0_i32 = arith.constant 0 : i32
    %c0_i32_0 = arith.constant 0 : i32
    return %c0_i32 : i32
  }
  func.func @transform_3(%arg0: i32) -> (i32, i32, i32) {
    %c0_i32 = arith.constant 0 : i32
    %c0_i32_0 = arith.constant 0 : i32
    %c0_i32_1 = arith.constant 0 : i32
    %c0_i32_2 = arith.constant 0 : i32
    return %c0_i32, %c0_i32_0, %c0_i32_1 : i32, i32, i32
  }
  func.func @transform_4(%arg0: i32) -> (i32, i32) {
    %c0_i32 = arith.constant 0 : i32
    %c0_i32_0 = arith.constant 0 : i32
    %c0_i32_1 = arith.constant 0 : i32
    return %c0_i32, %c0_i32_0 : i32, i32
  }
  func.func @transform_5(%arg0: i32) -> (i32, i32) {
    %c0_i32 = arith.constant 0 : i32
    %c0_i32_0 = arith.constant 0 : i32
    %c0_i32_1 = arith.constant 0 : i32
    return %c0_i32, %c0_i32_0 : i32, i32
  }
  func.func @transform_6(%arg0: i32) -> (i32, i32) {
    %c0_i32 = arith.constant 0 : i32
    %c0_i32_0 = arith.constant 0 : i32
    %c0_i32_1 = arith.constant 0 : i32
    return %c0_i32, %c0_i32_0 : i32, i32
  }
  func.func @transform_7(%arg0: i32) -> (i32, i32) {
    %c0_i32 = arith.constant 0 : i32
    %c0_i32_0 = arith.constant 0 : i32
    %c0_i32_1 = arith.constant 0 : i32
    return %c0_i32, %c0_i32_0 : i32, i32
  }
  func.func @transform_8(%arg0: i32) -> (i32, i32) {
    %c0_i32 = arith.constant 0 : i32
    %c0_i32_0 = arith.constant 0 : i32
    %c0_i32_1 = arith.constant 0 : i32
    return %c0_i32, %c0_i32_0 : i32, i32
  }
  func.func @transform_9(%arg0: i32) -> (i32, i32) {
    %c0_i32 = arith.constant 0 : i32
    %c0_i32_0 = arith.constant 0 : i32
    %c0_i32_1 = arith.constant 0 : i32
    return %c0_i32, %c0_i32_0 : i32, i32
  }
  func.func @transform_10(%arg0: i32) -> (i32, i32) {
    %c0_i32 = arith.constant 0 : i32
    %c0_i32_0 = arith.constant 0 : i32
    %c0_i32_1 = arith.constant 0 : i32
    return %c0_i32, %c0_i32_0 : i32, i32
  }
  func.func @transform_11(%arg0: i32) -> (i32, i32, i32) {
    %c0_i32 = arith.constant 0 : i32
    %c0_i32_0 = arith.constant 0 : i32
    %c0_i32_1 = arith.constant 0 : i32
    %c0_i32_2 = arith.constant 0 : i32
    return %c0_i32, %c0_i32_0, %c0_i32_1 : i32, i32, i32
  }
  func.func @transform_12(%arg0: i32) -> (i32, i32) {
    %c0_i32 = arith.constant 0 : i32
    %c0_i32_0 = arith.constant 0 : i32
    %c0_i32_1 = arith.constant 0 : i32
    return %c0_i32, %c0_i32_0 : i32, i32
  }
  func.func @transform_13(%arg0: i32) -> (i32, i32) {
    %c0_i32 = arith.constant 0 : i32
    %c0_i32_0 = arith.constant 0 : i32
    %c0_i32_1 = arith.constant 0 : i32
    return %c0_i32, %c0_i32_0 : i32, i32
  }
  func.func @transform_14(%arg0: i32) -> (i32, i32) {
    %c0_i32 = arith.constant 0 : i32
    %c0_i32_0 = arith.constant 0 : i32
    %c0_i32_1 = arith.constant 0 : i32
    return %c0_i32, %c0_i32_0 : i32, i32
  }
  func.func @transform_15(%arg0: i32) -> (i32, i32) {
    %c0_i32 = arith.constant 0 : i32
    %c0_i32_0 = arith.constant 0 : i32
    %c0_i32_1 = arith.constant 0 : i32
    return %c0_i32, %c0_i32_0 : i32, i32
  }
  func.func @transform_16(%arg0: i32) -> (i32, i32) {
    %c0_i32 = arith.constant 0 : i32
    %c0_i32_0 = arith.constant 0 : i32
    %c0_i32_1 = arith.constant 0 : i32
    return %c0_i32, %c0_i32_0 : i32, i32
  }
  func.func @transform_17(%arg0: i32) -> (i32, i32) {
    %c0_i32 = arith.constant 0 : i32
    %c0_i32_0 = arith.constant 0 : i32
    %c0_i32_1 = arith.constant 0 : i32
    return %c0_i32, %c0_i32_0 : i32, i32
  }
  func.func @transform_18(%arg0: i32) -> (i32, i32) {
    %c0_i32 = arith.constant 0 : i32
    %c0_i32_0 = arith.constant 0 : i32
    %c0_i32_1 = arith.constant 0 : i32
    return %c0_i32, %c0_i32_0 : i32, i32
  }
  func.func @transform_19(%arg0: i32) -> (i32, i32, i32) {
    %c0_i32 = arith.constant 0 : i32
    %c0_i32_0 = arith.constant 0 : i32
    %c0_i32_1 = arith.constant 0 : i32
    %c0_i32_2 = arith.constant 0 : i32
    return %c0_i32, %c0_i32_0, %c0_i32_1 : i32, i32, i32
  }
  func.func @transform_20(%arg0: i32) -> (i32, i32) {
    %c0_i32 = arith.constant 0 : i32
    %c0_i32_0 = arith.constant 0 : i32
    %c0_i32_1 = arith.constant 0 : i32
    return %c0_i32, %c0_i32_0 : i32, i32
  }
  func.func @transform_21(%arg0: i32) -> (i32, i32) {
    %c0_i32 = arith.constant 0 : i32
    %c0_i32_0 = arith.constant 0 : i32
    %c0_i32_1 = arith.constant 0 : i32
    return %c0_i32, %c0_i32_0 : i32, i32
  }
  func.func @transform_22(%arg0: i32) -> (i32, i32) {
    %c0_i32 = arith.constant 0 : i32
    %c0_i32_0 = arith.constant 0 : i32
    %c0_i32_1 = arith.constant 0 : i32
    return %c0_i32, %c0_i32_0 : i32, i32
  }
  func.func @transform_23(%arg0: i32) -> (i32, i32) {
    %c0_i32 = arith.constant 0 : i32
    %c0_i32_0 = arith.constant 0 : i32
    %c0_i32_1 = arith.constant 0 : i32
    return %c0_i32, %c0_i32_0 : i32, i32
  }
  func.func @transform_24(%arg0: i32) -> (i32, i32) {
    %c0_i32 = arith.constant 0 : i32
    %c0_i32_0 = arith.constant 0 : i32
    %c0_i32_1 = arith.constant 0 : i32
    return %c0_i32, %c0_i32_0 : i32, i32
  }
  func.func @transform_25(%arg0: i32) -> (i32, i32) {
    %c0_i32 = arith.constant 0 : i32
    %c0_i32_0 = arith.constant 0 : i32
    %c0_i32_1 = arith.constant 0 : i32
    return %c0_i32, %c0_i32_0 : i32, i32
  }
  func.func @transform_26(%arg0: i32) -> (i32, i32, i32) {
    %c0_i32 = arith.constant 0 : i32
    %c0_i32_0 = arith.constant 0 : i32
    %c0_i32_1 = arith.constant 0 : i32
    return %arg0, %c0_i32, %c0_i32_0 : i32, i32, i32
  }
  func.func @transform_27(%arg0: i32) -> (i32, i32, i32) {
    %c0_i32 = arith.constant 0 : i32
    %c0_i32_0 = arith.constant 0 : i32
    %c0_i32_1 = arith.constant 0 : i32
    return %arg0, %c0_i32, %c0_i32_0 : i32, i32, i32
  }
  func.func @transform_28(%arg0: i32) -> (i32, i32, i32) {
    %c0_i32 = arith.constant 0 : i32
    %c0_i32_0 = arith.constant 0 : i32
    %c0_i32_1 = arith.constant 0 : i32
    return %arg0, %c0_i32, %c0_i32_0 : i32, i32, i32
  }
}

</mosaic_0001>

<bundles_post_ra>
// kernel: tpu_custom_call.1
= control target key start
LH: loop header
LB: loop body
LE: loop exit
PB: predicated region body
PF: predicated region fallthrough
CT: control target
= control target key end

     0   :  { %s4465_s0 = inlined_call_operand.hbm [shape: f32[2,8,16], index: 0, kind: input, shape index: {}]   ;;  %s4466_s1 = inlined_call_operand.vmem [shape: f32[2,8,4], index: 1, kind: input, shape index: {}]   ;;  %s4467_s2 = inlined_call_operand.hbm [shape: f32[2], index: 2, kind: input, shape index: {}]   ;;  %s4468_s3 = inlined_call_operand.vmem [shape: f32[3,16,32], index: 3, kind: input, shape index: {}]   ;;  %s4469_s4 = inlined_call_operand.hbm [shape: f32[1,32], index: 4, kind: input, shape index: {}]   ;;  %s4470_s5 = inlined_call_operand.hbm [shape: f32[1,32], index: 5, kind: input, shape index: {}]   ;;  %s4471_s6 = inlined_call_operand.hbm [shape: f32[4,32], index: 6, kind: input, shape index: {}]   ;;  %s4472_s7 = inlined_call_operand.hbm [shape: f32[1,32], index: 7, kind: input, shape index: {}]   ;;  %s4473_s8 = inlined_call_operand.hbm [shape: f32[4,32], index: 8, kind: input, shape index: {}]   ;;  %s4474_s9 = inlined_call_operand.hbm [shape: f32[1,32], index: 9, kind: input, shape index: {}]   ;;  %s4475_s10 = inlined_call_operand.vmem [shape: f32[32,16], index: 10, kind: input, shape index: {}]   ;;  %s4476_s11 = inlined_call_operand.vmem [shape: f32[3,16,32], index: 11, kind: input, shape index: {}]   ;;  %s4477_s12 = inlined_call_operand.hbm [shape: f32[1,32], index: 12, kind: input, shape index: {}]   ;;  %s4478_s13 = inlined_call_operand.hbm [shape: f32[1,32], index: 13, kind: input, shape index: {}]   ;;  %s4479_s14 = inlined_call_operand.hbm [shape: f32[4,32], index: 14, kind: input, shape index: {}]   ;;  %s4480_s15 = inlined_call_operand.hbm [shape: f32[1,32], index: 15, kind: input, shape index: {}]   ;;  %s4481_s16 = inlined_call_operand.vmem [shape: f32[4,32], index: 16, kind: input, shape index: {}]   ;;  %s4482_s17 = inlined_call_operand.hbm [shape: f32[1,32], index: 17, kind: input, shape index: {}]   ;;  %s4483_s18 = inlined_call_operand.vmem [shape: f32[32,16], index: 18, kind: input, shape index: {}]   ;;  %s4484_s19 = inlined_call_operand.vmem [shape: f32[3,16,32], index: 19, kind: input, shape index: {}]   ;;  %s4485_s20 = inlined_call_operand.hbm [shape: f32[1,32], index: 20, kind: input, shape index: {}]   ;;  %s4486_s21 = inlined_call_operand.vmem [shape: f32[1,32], index: 21, kind: input, shape index: {}]   ;;  %s4487_s22 = inlined_call_operand.vmem [shape: f32[4,32], index: 22, kind: input, shape index: {}]   ;;  %s4488_s23 = inlined_call_operand.vmem [shape: f32[1,32], index: 23, kind: input, shape index: {}]   ;;  %s4489_s24 = inlined_call_operand.vmem [shape: f32[4,32], index: 24, kind: input, shape index: {}]   ;;  %s4490_s25 = inlined_call_operand.vmem [shape: f32[1,32], index: 25, kind: input, shape index: {}]   ;;  %s4491_s26 = inlined_call_operand.hbm [shape: f32[2,8,32], index: 26, kind: output, shape index: {0}]   ;;  %s4492_s27 = inlined_call_operand.hbm [shape: f32[2,8,32], index: 27, kind: output, shape index: {1}]   ;;  %s4493_s28 = inlined_call_operand.hbm [shape: f32[2,8,32], index: 28, kind: output, shape index: {2}]  }
   0x1   :  { %4508 = sst [smem:[#allocation44_spill]] %s4465_s0 }
   0x2   :  { %4509 = sst [smem:[#allocation45_spill]] %s4466_s1 }
   0x3   :  { %4510 = sst [smem:[#allocation46_spill]] %s4467_s2 }
   0x4   :  { %4511 = sst [smem:[#allocation47_spill]] %s4468_s3 }
   0x5   :  { %4512 = sst [smem:[#allocation48_spill]] %s4469_s4 }
   0x6   :  { %4513 = sst [smem:[#allocation49_spill]] %s4470_s5 }
   0x7   :  { %4514 = sst [smem:[#allocation50_spill]] %s4471_s6 }
   0x8   :  { %4515 = sst [smem:[#allocation51_spill]] %s4472_s7 }
   0x9   :  { %4516 = sst [smem:[#allocation52_spill]] %s4473_s8 }
   0xa   :  { %4517 = sst [smem:[#allocation53_spill]] %s4474_s9 }
   0xb   :  { %4518 = sst [smem:[#allocation54_spill]] %s4475_s10 }
   0xc   :  { %4519 = sst [smem:[#allocation55_spill]] %s4476_s11 }
   0xd   :  { %4520 = sst [smem:[#allocation56_spill]] %s4477_s12 }
   0xe   :  { %4521 = sst [smem:[#allocation57_spill]] %s4478_s13 }
   0xf   :  { %4522 = sst [smem:[#allocation58_spill]] %s4479_s14 }
  0x10   :  { %4523 = sst [smem:[#allocation59_spill]] %s4480_s15 }
  0x11   :  { %4524 = sst [smem:[#allocation60_spill]] %s4482_s17 }
  0x12   :  { %4525 = sst [smem:[#allocation61_spill]] %s4485_s20 }
  0x13   :  { %4526 = sst [smem:[#allocation62_spill]] %s4486_s21 }
  0x14   :  { %4527 = sst [smem:[#allocation63_spill]] %s4488_s23 }
  0x15   :  { %4528 = sst [smem:[#allocation64_spill]] %s4490_s25 }
  0x16   :  { %4529 = sst [smem:[#allocation65_spill]] %s4493_s28 }
  0x17   :  { %34 = vsyncpa [#allocation6], 0 }
  0x18   :  { %36 = vsyncpa [#allocation6 + $0x1], 0 }
  0x19   :  { %37 = vsyncpa [#allocation8], 0 }
  0x1a   :  { %38 = vsyncpa [#allocation11], 0 }
  0x1b   :  { %39 = vsyncpa [#allocation14], 0 }
  0x1c   :  { %40 = vsyncpa [#allocation17], 0 }
  0x1d   :  { %41 = vsyncpa [#allocation20], 0 }
  0x1e   :  { %42 = vsyncpa [#allocation23], 0 }
  0x1f   :  { %43 = vsyncpa [#allocation26], 0 }
  0x20   :  { %44 = vsyncpa [#allocation7], 0 }
  0x21   :  { %46 = vsyncpa [#allocation7 + $0x1], 0 }
  0x22   :  { %47 = vsyncpa [#allocation30], 0 }
  0x23   :  { %49 = vsyncpa [#allocation30 + $0x1], 0  ;;  %s3906_s8 = smov 0   ;;  %s3908_s5 = smov 0  }
  0x24   :  { %s3910_s9 = smov 0   ;;  %s3912_s30 = smov 0  }
  0x25 LB: > { %4530 = sst [smem:[#allocation42_spill]] %s3736_s9  ;;  %s3742_s3 = smov [#allocation10]   ;;  %s3740_s30 = sphi %s3912_s30, %s4587_s30   ;;  %s3736_s9 = sphi %s3910_s9, %s4584_s9   ;;  %s3732_s5 = sphi %s3908_s5, %s4586_s5   ;;  %s3728_s8 = sphi %s3906_s8, %s4585_s8  }
  0x26   : > { %s719_s6 = sshll.u32 %s3742_s3, 4  ;;  %s3927_s10 = sadd.s32 4294967295, %s3740_s30   ;;  %s720_s6 = int_to_ptr.vmem [resolvable:$true] %s719_s6 }
  0x27   : > { %p2796_p0 = scmp.ge.s32.totalorder %s3740_s30, 1  ;;  %p4499_p1 = scmp.eq.s32.totalorder %s3927_s10, 0 }
  0x28   : > { %p694_p2 = scmp.lt.s32.totalorder %s3740_s30, 3  ;;  %s3743_s11 = smov [#allocation13]  }
  0x29   : > { %s741_s29 = sshll.u32 %s3743_s11, 4  ;;  %s3744_s2 = smov [#allocation16]   ;;  %s742_s29 = int_to_ptr.vmem [resolvable:$true] %s741_s29 }
  0x2a   : > { %p3932_p3 = pnand %p2796_p0, %p694_p2  ;;  %s763_s7 = sshll.u32 %s3744_s2, 4  ;;  %s3945_s7 = int_to_ptr.vmem [resolvable:$true] %s763_s7 }
  0x2b   : > { %s3745_s1 = smov [#allocation19]   ;;  %s3252_s11 = scalar_lea.vmem %s720_s6, 16 }
  0x2c   : > { %s4531_s0 = scalar_select %p3932_p3, 1, 0 }
  0x2d   : > { %p3112_p5 = pneg %p3932_p3  ;;  %s3947_s4 = sshll.u32 %s3745_s1, 4  ;;  %s792_s4 = int_to_ptr.vmem [resolvable:$true] %s3947_s4 }
  0x2e   : > { %p3253_p8 = scmp.ne.s32.totalorder %s720_s6, %s3252_s11  ;;  %s3259_s2 = scalar_lea.vmem %s720_s6, 32 }
  0x2f   : > { %p3941_p6 = pnand %p3112_p5, %p4499_p1  ;;  %p3260_p11 = scmp.lt.s32.totalorder %s720_s6, %s720_s6 }
  0x30   : > { %p3261_p12 = scmp.lt.s32.totalorder %s3259_s2, %s3252_s11 }
  0x31   : > { %p3951_p7 = pneg %p3941_p6 }
  0x32   : > { %p3262_p13 = por %p3261_p12, %p3260_p11 }
  0x33   : > { %p3255_p9 = pnand %p3253_p8, %p3951_p7 }
  0x35   : > { %p3256_p10 = pneg %p3255_p9 }
  0x37   : > { %p3263_p0 = pnand %p3262_p13, %p3256_p10 }
  0x39   : > { %3266 = shalt.err (!%p3263_p0)
}
  0x3a   : > { %s4534_s25 = sld [smem:[#allocation48_spill]]  ;;  %s3278_s23 = scalar_lea.vmem %s742_s29, 64 }
  0x3b   : > { %p3279_p2 = scmp.ne.s32.totalorder %s742_s29, %s3278_s23  ;;  %p3286_p8 = scmp.lt.s32.totalorder %s742_s29, %s742_s29 }
  0x3c   : > { %p3287_p9 = scmp.lt.s32.totalorder %s3278_s23, %s3278_s23 }
  0x3d   : > { %p3281_p5 = pnand %p3279_p2, %p3951_p7 }
  0x3e   : > { %p3288_p1 = por %p3287_p9, %p3286_p8 }
  0x3f   : > { %p3282_p4 = pneg %p3281_p5 }
  0x40   : > { %3118 = dma.hbm_to_vmem [thread:$0]  (!%p3941_p6), %s4534_s25, 16, %s720_s6, [#allocation11]  }
  0x41   : > { %p3289_p3 = pnand %p3288_p1, %p3282_p4 }
  0x43   : > { %3292 = shalt.err (!%p3289_p3)
}
  0x44   : > { %s4535_s21 = sld [smem:[#allocation50_spill]]  ;;  %s3304_s25 = scalar_lea.vmem %s3945_s7, 64 }
  0x45   : > { %p3305_p10 = scmp.ne.s32.totalorder %s3945_s7, %s3304_s25  ;;  %p3312_p13 = scmp.lt.s32.totalorder %s3945_s7, %s3945_s7 }
  0x46   : > { %p3313_p0 = scmp.lt.s32.totalorder %s3304_s25, %s3304_s25 }
  0x47   : > { %p3307_p11 = pnand %p3305_p10, %p3951_p7 }
  0x48   : > { %p3314_p1 = por %p3313_p0, %p3312_p13 }
  0x49   : > { %p3308_p12 = pneg %p3307_p11 }
  0x4a   : > { %3124 = dma.hbm_to_vmem [thread:$0]  (!%p3941_p6), %s4535_s21, 64, %s742_s29, [#allocation14]  }
  0x4b   : > { %p3315_p3 = pnand %p3314_p1, %p3308_p12 }
  0x4d   : > { %3318 = shalt.err (!%p3315_p3)
}
  0x4e   : > { %s4536_s6 = sld [smem:[#allocation52_spill]]  ;;  %s3746_s21 = smov [#allocation22]  }
  0x4f   : > { %s813_s29 = sshll.u32 %s3746_s21, 4  ;;  %s3330_s1 = scalar_lea.vmem %s792_s4, 16  ;;  %s814_s29 = int_to_ptr.vmem [resolvable:$true] %s813_s29 }
  0x50   : > { %p3331_p4 = scmp.ne.s32.totalorder %s792_s4, %s3330_s1  ;;  %s3337_s11 = scalar_lea.vmem %s792_s4, 32 }
  0x51   : > { %p3338_p8 = scmp.lt.s32.totalorder %s792_s4, %s792_s4  ;;  %p3339_p9 = scmp.lt.s32.totalorder %s3337_s11, %s3330_s1 }
  0x52   : > { %p3333_p2 = pnand %p3331_p4, %p3951_p7 }
  0x53   : > { %p3340_p10 = por %p3339_p9, %p3338_p8 }
  0x54   : > { %3130 = dma.hbm_to_vmem [thread:$0]  (!%p3941_p6), %s4536_s6, 64, %s3945_s7, [#allocation17]  }
  0x55   : > { %p3334_p5 = pneg %p3333_p2 }
  0x57   : > { %p3341_p11 = pnand %p3340_p10, %p3334_p5 }
  0x59   : > { %3344 = shalt.err (!%p3341_p11)
}
  0x5a   : > { %s4537_s23 = sld [smem:[#allocation56_spill]]  ;;  %s3356_s7 = scalar_lea.vmem %s814_s29, 64 }
  0x5b   : > { %p3357_p12 = scmp.ne.s32.totalorder %s814_s29, %s3356_s7  ;;  %p3364_p1 = scmp.lt.s32.totalorder %s814_s29, %s814_s29 }
  0x5c   : > { %p3365_p3 = scmp.lt.s32.totalorder %s3356_s7, %s3356_s7 }
  0x5d   : > { %p3359_p13 = pnand %p3357_p12, %p3951_p7 }
  0x5e   : > { %p3366_p4 = por %p3365_p3, %p3364_p1 }
  0x5f   : > { %p3360_p0 = pneg %p3359_p13 }
  0x60   : > { %3136 = dma.hbm_to_vmem [thread:$0]  (!%p3941_p6), %s4537_s23, 16, %s792_s4, [#allocation20]  }
  0x61   : > { %p3367_p2 = pnand %p3366_p4, %p3360_p0 }
  0x63   : > { %3370 = shalt.err (!%p3367_p2)
}
  0x64   : > { %s4538_s14 = sld [smem:[#allocation58_spill]]  ;;  %s3747_s21 = smov [#allocation25]  }
  0x65   : > { %s838_s4 = sshll.u32 %s3747_s21, 4  ;;  %s839_s4 = int_to_ptr.vmem [resolvable:$true] %s838_s4 }
  0x66   : > { %s3382_s1 = scalar_lea.vmem %s839_s4, 16  ;;  %s3389_s11 = scalar_lea.vmem %s839_s4, 32 }
  0x67   : > { %p3383_p5 = scmp.ne.s32.totalorder %s839_s4, %s3382_s1  ;;  %p3390_p10 = scmp.lt.s32.totalorder %s839_s4, %s839_s4 }
  0x68   : > { %p3391_p11 = scmp.lt.s32.totalorder %s3389_s11, %s3382_s1 }
  0x69   : > { %p3385_p8 = pnand %p3383_p5, %p3951_p7 }
  0x6a   : > { %3142 = dma.hbm_to_vmem [thread:$0]  (!%p3941_p6), %s4538_s14, 64, %s814_s29, [#allocation23]  }
  0x6b   : > { %p3386_p9 = pneg %p3385_p8  ;;  %p3392_p12 = por %p3391_p11, %p3390_p10 }
  0x6d   : > { %p3393_p13 = pnand %p3392_p12, %p3386_p9 }
  0x6f   : > { %3396 = shalt.err (!%p3393_p13)
}
  0x70   : > { %s4539_s17 = sld [smem:[#allocation60_spill]]  ;;  %s3748_s29 = smov [#allocation9]  }
  0x71   : > { %s4540_s28 = sld [smem:[#allocation46_spill]]  ;;  %s3749_s6 = smov [#allocation12]  }
  0x72   : > { %s730_s21 = sshll.u32 %s3749_s6, 4  ;;  %s3750_s1 = smov [#allocation15]   ;;  %s731_s21 = int_to_ptr.vmem [resolvable:$true] %s730_s21 }
  0x73   : > { %s752_s11 = sshll.u32 %s3750_s1, 4  ;;  %s3419_s14 = scalar_lea.vmem %s731_s21, 16  ;;  %s753_s11 = int_to_ptr.vmem [resolvable:$true] %s752_s11 }
  0x74   : > { %p3420_p0 = scmp.ne.s32.totalorder %s731_s21, %s3419_s14  ;;  %s3426_s2 = scalar_lea.vmem %s731_s21, 32 }
  0x75   : > { %p3427_p4 = scmp.lt.s32.totalorder %s731_s21, %s731_s21  ;;  %p3428_p2 = scmp.lt.s32.totalorder %s3426_s2, %s3419_s14 }
  0x76   : > { %3148 = dma.hbm_to_vmem [thread:$0]  (!%p3941_p6), %s4539_s17, 16, %s839_s4, [#allocation26]  }
  0x77   : > { %3115 = dma.hbm_to_smem (!%p3941_p6), %s4540_s28, 16, %s3748_s29, [#allocation8]  }
  0x78   : > { %p3422_p1 = pnand %p3420_p0, %p3951_p7  ;;  %p3429_p5 = por %p3428_p2, %p3427_p4 }
  0x7a   : > { %p3423_p3 = pneg %p3422_p1 }
  0x7c   : > { %p3430_p8 = pnand %p3429_p5, %p3423_p3 }
  0x7e   : > { %3433 = shalt.err (!%p3430_p8)
}
  0x7f   : > { %s4541_s29 = sld [smem:[#allocation49_spill]]  ;;  %s3445_s23 = scalar_lea.vmem %s753_s11, 16 }
  0x80   : > { %p3446_p9 = scmp.ne.s32.totalorder %s753_s11, %s3445_s23  ;;  %s3452_s7 = scalar_lea.vmem %s753_s11, 32 }
  0x81   : > { %p3453_p12 = scmp.lt.s32.totalorder %s753_s11, %s753_s11  ;;  %p3454_p13 = scmp.lt.s32.totalorder %s3452_s7, %s3445_s23 }
  0x82   : > { %p3448_p10 = pnand %p3446_p9, %p3951_p7 }
  0x83   : > { %p3455_p0 = por %p3454_p13, %p3453_p12 }
  0x84   : > { %p3449_p11 = pneg %p3448_p10 }
  0x85   : > { %3121 = dma.hbm_to_vmem [thread:$0]  (!%p3941_p6), %s4541_s29, 16, %s731_s21, [#allocation11]  }
  0x86   : > { %p3456_p1 = pnand %p3455_p0, %p3449_p11 }
  0x88   : > { %3459 = shalt.err (!%p3456_p1)
}
  0x89   : > { %s4542_s6 = sld [smem:[#allocation51_spill]]  ;;  %s3751_s21 = smov [#allocation18]  }
  0x8a   : > { %s774_s1 = sshll.u32 %s3751_s21, 4  ;;  %s3752_s2 = smov [#allocation21]   ;;  %s775_s1 = int_to_ptr.vmem [resolvable:$true] %s774_s1 }
  0x8b   : > { %s802_s4 = sshll.u32 %s3752_s2, 4  ;;  %s3471_s25 = scalar_lea.vmem %s775_s1, 16  ;;  %s803_s4 = int_to_ptr.vmem [resolvable:$true] %s802_s4 }
  0x8c   : > { %p3472_p3 = scmp.ne.s32.totalorder %s775_s1, %s3471_s25  ;;  %s3478_s29 = scalar_lea.vmem %s775_s1, 32 }
  0x8d   : > { %p3479_p5 = scmp.lt.s32.totalorder %s775_s1, %s775_s1  ;;  %p3480_p8 = scmp.lt.s32.totalorder %s3478_s29, %s3471_s25 }
  0x8e   : > { %p3474_p4 = pnand %p3472_p3, %p3951_p7 }
  0x8f   : > { %3127 = dma.hbm_to_vmem [thread:$0]  (!%p3941_p6), %s4542_s6, 16, %s753_s11, [#allocation14]  }
  0x90   : > { %p3475_p2 = pneg %p3474_p4  ;;  %p3481_p9 = por %p3480_p8, %p3479_p5 }
  0x92   : > { %p3482_p10 = pnand %p3481_p9, %p3475_p2 }
  0x94   : > { %3485 = shalt.err (!%p3482_p10)
}
  0x95   : > { %s4543_s7 = sld [smem:[#allocation53_spill]]  ;;  %s3497_s14 = scalar_lea.vmem %s803_s4, 16 }
  0x96   : > { %p3498_p11 = scmp.ne.s32.totalorder %s803_s4, %s3497_s14  ;;  %s3504_s28 = scalar_lea.vmem %s803_s4, 32 }
  0x97   : > { %p3505_p0 = scmp.lt.s32.totalorder %s803_s4, %s803_s4  ;;  %p3506_p1 = scmp.lt.s32.totalorder %s3504_s28, %s3497_s14 }
  0x98   : > { %p3500_p12 = pnand %p3498_p11, %p3951_p7 }
  0x99   : > { %p3507_p3 = por %p3506_p1, %p3505_p0 }
  0x9a   : > { %p3501_p13 = pneg %p3500_p12 }
  0x9b   : > { %3133 = dma.hbm_to_vmem [thread:$0]  (!%p3941_p6), %s4543_s7, 16, %s775_s1, [#allocation17]  }
  0x9c   : > { %p3508_p4 = pnand %p3507_p3, %p3501_p13 }
  0x9e   : > { %3511 = shalt.err (!%p3508_p4)
}
  0x9f   : > { %s4544_s13 = sld [smem:[#allocation57_spill]]  ;;  %s3753_s1 = smov [#allocation24]  }
  0xa0   : > { %s824_s2 = sshll.u32 %s3753_s1, 4  ;;  %s3754_s25 = smov [#allocation27]   ;;  %s825_s2 = int_to_ptr.vmem [resolvable:$true] %s824_s2 }
  0xa1   : > { %s855_s29 = sshll.u32 %s3754_s25, 4  ;;  %s3523_s23 = scalar_lea.vmem %s825_s2, 16  ;;  %s856_s29 = int_to_ptr.vmem [resolvable:$true] %s855_s29 }
  0xa2   : > { %p3524_p2 = scmp.ne.s32.totalorder %s825_s2, %s3523_s23  ;;  %s3530_s11 = scalar_lea.vmem %s825_s2, 32 }
  0xa3   : > { %p3531_p9 = scmp.lt.s32.totalorder %s825_s2, %s825_s2  ;;  %p3532_p10 = scmp.lt.s32.totalorder %s3530_s11, %s3523_s23 }
  0xa4   : > { %p3526_p5 = pnand %p3524_p2, %p3951_p7 }
  0xa5   : > { %3139 = dma.hbm_to_vmem [thread:$0]  (!%p3941_p6), %s4544_s13, 16, %s803_s4, [#allocation20]  }
  0xa6   : > { %p3527_p8 = pneg %p3526_p5  ;;  %p3533_p11 = por %p3532_p10, %p3531_p9 }
  0xa8   : > { %p3534_p12 = pnand %p3533_p11, %p3527_p8 }
  0xaa   : > { %3537 = shalt.err (!%p3534_p12)
}
  0xab   : > { %s4545_s15 = sld [smem:[#allocation59_spill]]  ;;  %s3549_s14 = scalar_lea.vmem %s856_s29, 16 }
  0xac   : > { %p3550_p13 = scmp.ne.s32.totalorder %s856_s29, %s3549_s14  ;;  %s3556_s28 = scalar_lea.vmem %s856_s29, 32 }
  0xad   : > { %p3557_p3 = scmp.lt.s32.totalorder %s856_s29, %s856_s29  ;;  %p3558_p4 = scmp.lt.s32.totalorder %s3556_s28, %s3549_s14 }
  0xae   : > { %p3552_p0 = pnand %p3550_p13, %p3951_p7 }
  0xaf   : > { %p3559_p2 = por %p3558_p4, %p3557_p3 }
  0xb0   : > { %p3553_p1 = pneg %p3552_p0 }
  0xb1   : > { %3145 = dma.hbm_to_vmem [thread:$0]  (!%p3941_p6), %s4545_s15, 16, %s825_s2, [#allocation23]  }
  0xb2   : > { %p3560_p5 = pnand %p3559_p2, %p3553_p1 }
  0xb4   : > { %3563 = shalt.err (!%p3560_p5)
}
  0xb5   : > { %s4546_s20 = sld [smem:[#allocation61_spill]]  ;;  %s4501_s12 = sadd.s32 4294967294, %s3740_s30  }
  0xb6   : > { %s4052_s3 = sadd.s32 1, %s3740_s30   ;;  %s62_s1 = sadd.s32 1, %s3736_s9 }
  0xb7   : > { %s59_s2 = ssub.s32 %s3740_s30, %s4052_s3  ;;  %p69_p7 = scmp.ne.s32.totalorder %s3736_s9, %s3732_s5 }
  0xb8   : > { %p60_p8 = scmp.eq.s32.totalorder %s59_s2, 0  ;;  %p70_p9 = scmp.eq.s32.totalorder %s3740_s30, 0 }
  0xb9   : > { %p75_p10 = scmp.ne.s32.totalorder %s3732_s5, %s3728_s8  ;;  %p629_p11 = scmp.eq.s32.totalorder %s3927_s10, 1 }
  0xba   : > { %s4064_s25 = scalar_select %p60_p8, %s3736_s9, %s62_s1  }
  0xbb   : > { %3151 = dma.hbm_to_vmem [thread:$0]  (!%p3941_p6), %s4546_s20, 16, %s856_s29, [#allocation26]  }
  0xbc   : > { %4547 = sst [smem:[#allocation43_spill]] %s4064_s25  ;;  %p71_p12 = por %p70_p9, %p69_p7 }
  0xbd   : > { %p4548_p13 = scmp.eq.s32.totalorder %s3927_s10, 0  ;;  %p4072_p6 = por %p629_p11, %p69_p7 }
  0xbe   : > { %p635_p1 = scmp.eq.s32.totalorder %s4501_s12, 1  ;;  %p3179_p3 = scmp.lt.s32.totalorder %s3740_s30, 2 }
  0xbf   : > { %p4068_p0 = por %p4548_p13, %p75_p10  ;;  %s881_s11 = sand.u32 1, %s3736_s9  }
  0xc0   : > { %s4550_s29 = scalar_select %p4072_p6, 1, 0 }
  0xc1   : > { %s4549_s23 = scalar_select %p4068_p0, 1, 0 }
  0xc2   : > { %p4080_p4 = por %p635_p1, %p75_p10  ;;  %s2811_s4 = sshll.u32 %s881_s11, 3 }
  0xc3   : > { %s2812_s14 = sshll.u32 %s3740_s30, 7  ;;  %s4552_s21 = sld [smem:[#allocation44_spill]] }
  0xc4   : > { %s4551_s7 = scalar_select %p4080_p4, 1, 0 }
  0xc5   : > { %s885_s2 = scalar_lea.vmem [#allocation5], %s2811_s4  ;;  %p4090_p2 = pnand %p3179_p3, %p71_p12 }
  0xc6   : > { %s892_s13 = sshll.u32 %s885_s2, 4  ;;  %s882_s15 = scalar_lea.sflag [#allocation6], %s881_s11  ;;  %s893_s13 = int_to_ptr.vmem [resolvable:$true] %s892_s13 }
  0xc7   : > { %p3566_p7 = pneg %p4090_p2 }
  0xc9   : > { %s4088_s1 = scalar_lea.hbm %s4552_s21, %s2812_s14  ;;  %s3569_s6 = scalar_lea.hbm %s4552_s21, 256 }
  0xca   : > { %s3564_s17 = scalar_lea.hbm %s4088_s1, 128  ;;  %p3570_p10 = scmp.lt.s32.totalorder %s4088_s1, %s4552_s21 }
  0xcb   : > { %p3565_p5 = scmp.ne.s32.totalorder %s4088_s1, %s3564_s17  ;;  %p3571_p11 = scmp.lt.s32.totalorder %s3569_s6, %s3564_s17 }
  0xcd   : > { %p3567_p8 = pnand %p3566_p7, %p3565_p5  ;;  %p3572_p12 = por %p3571_p11, %p3570_p10 }
  0xcf   : > { %p3568_p9 = pneg %p3567_p8 }
  0xd1   : > { %p3573_p13 = pnand %p3572_p12, %p3568_p9 }
  0xd3   : > { %3576 = shalt.err (!%p3573_p13)
}
  0xd4   : > { %s3577_s2 = scalar_lea.vmem %s893_s13, 128  ;;  %s3755_s11 = smov [#allocation5]  }
  0xd5   : > { %p3578_p1 = scmp.ne.s32.totalorder %s893_s13, %s3577_s2  ;;  %s3582_s25 = sshll.u32 %s3755_s11, 4  ;;  %s3583_s25 = int_to_ptr.vmem [resolvable:$false] %s3582_s25 }
  0xd6   : > { %s3584_s9 = scalar_lea.vmem %s3583_s25, 256  ;;  %p3585_p5 = scmp.lt.s32.totalorder %s893_s13, %s3583_s25 }
  0xd7   : > { %p3580_p3 = pnand %p3578_p1, %p3566_p7  ;;  %p3586_p8 = scmp.lt.s32.totalorder %s3584_s9, %s3577_s2 }
  0xd9   : > { %p3581_p4 = pneg %p3580_p3  ;;  %p3587_p6 = por %p3586_p8, %p3585_p5 }
  0xdb   : > { %p3588_p0 = pnand %p3587_p6, %p3581_p4 }
  0xdd   : > { %3591 = shalt.err (!%p3588_p0)
}
  0xde   : > { %3155 = dma.hbm_to_vmem [thread:$0]  (!%p4090_p2), %s4088_s1, 128, %s893_s13, %s882_s15  }
  0xdf   : > { %p4554_p9 = scmp.ne.s32.totalorder %s4531_s0, 0 }
  0xe0   : > { %s4111_s17 = sand.u32 (!%p4554_p9), 1, %s3732_s5   ;;  %p4555_p6 = scmp.ne.s32.totalorder (!%p4554_p9), %s4549_s23, 0 }
  0xe1   : > { %908 = sbr.rel (%p4554_p9) target bundleno = 1321 (0x529), region = 124  ;;  %s4114_s20 = sshll.u32 (!%p4554_p9), %s4111_s17, 3 }
  0xe2   : > { %s911_s9 = scalar_lea.sflag (!%p4554_p9), [#allocation6], %s4111_s17  ;;  %s914_s25 = scalar_lea.vmem (!%p4554_p9), [#allocation5], %s4114_s20 }
  0xe6   : > { %3687 = dma.done.wait (%p4555_p6), %s911_s9, 128  }
  0xe7   : > { %3689 = vsyncadd (%p4555_p6), %s911_s9, 4294967168  ;;  %p4556_p0 = scmp.eq.s32.totalorder %s3927_s10, 0 }
  0xe9   : > { %3691 = dma.done.wait (%p4556_p0), [#allocation8], 16   ;;  %p4557_p4 = pmov %p4556_p0 }
  0xea   : > { %p4558_p2 = pmov %p4556_p0 }
  0xeb   : > { %3693 = vsyncadd (%p4557_p4), [#allocation8], 4294967280 }
  0xec   : > { %3695 = dma.done.wait (%p4558_p2), [#allocation11], 32   ;;  %p4559_p7 = pmov %p4556_p0 }
  0xed   : > { %p4560_p10 = pmov %p4556_p0 }
  0xee   : > { %3697 = vsyncadd (%p4559_p7), [#allocation11], 4294967264 }
  0xef   : > { %3699 = dma.done.wait (%p4560_p10), [#allocation14], 80   ;;  %p4561_p11 = pmov %p4556_p0 }
  0xf0   : > { %p4562_p12 = pmov %p4556_p0 }
  0xf1   : > { %3701 = vsyncadd (%p4561_p11), [#allocation14], 4294967216 }
  0xf2   : > { %3703 = dma.done.wait (%p4562_p12), [#allocation17], 80   ;;  %p4563_p13 = pmov %p4556_p0 }
  0xf3   : > { %p4564_p1 = pmov %p4556_p0 }
  0xf4   : > { %3705 = vsyncadd (%p4563_p13), [#allocation17], 4294967216 }
  0xf5   : > { %3707 = dma.done.wait (%p4564_p1), [#allocation20], 32   ;;  %p4565_p3 = pmov %p4556_p0 }
  0xf6   : > { %p4566_p5 = pmov %p4556_p0 }
  0xf7   : > { %3709 = vsyncadd (%p4565_p3), [#allocation20], 4294967264 }
  0xf8   : > { %3711 = dma.done.wait (%p4566_p5), [#allocation23], 80   ;;  %p4567_p8 = pmov %p4556_p0 }
  0xf9   : > { %p4568_p9 = pmov %p4556_p0 }
  0xfa   : > { %3713 = vsyncadd (%p4567_p8), [#allocation23], 4294967216 }
  0xfb   : > { %3715 = dma.done.wait (%p4568_p9), [#allocation26], 32   ;;  %p4569_p6 = pmov %p4556_p0 }
  0xfd   : > { %3717 = vsyncadd (%p4569_p6), [#allocation26], 4294967264 }
  0xfe   : > { %971 = sfence }
  0xff   : > { %s4570_s0 = sld [smem:[#allocation47_spill]]  ;;  %vm1059_vm0 = vcmask 130048   ;;  %v3756_v2 = vmov 0.0   ;;  %vm1061_vm1 = vcmask 123904   ;;  %vm3757_vm2 = vmmov 0   ;;  %v1063_v5 = vld [vmem:[%s914_s25] sm:$0xff] }
 0x100   : > { %2937 = vmatprep.subr.mxu0 %v3756_v2  ;;  %2944 = vmatprep.subr.mxu1 %v3756_v2  ;;  %1060 = vst.msk [vmem:[#allocation2] sm:$0xff] %vm1059_vm0, %v3756_v2  ;;  %s1064_s28 = sld [smem:[#allocation9]]  ;;  %1567 = vst.msk [vmem:[#allocation3] sm:$0xff] %vm1059_vm0, %v3756_v2  ;;  %p1054_p0 = scmp.lt.s32.totalorder %s3927_s10, 1  ;;  %v1319_v13 = vld [vmem:[#allocation13] sm:$0xf] }
 0x101   : > { %2060 = vst.msk [vmem:[#allocation4] sm:$0xff] %vm1059_vm0, %v3756_v2  ;;  %s2832_s2 = sld [smem:[#allocation9 + $0x1]]  ;;  %2941 = vmatprep.mubr.msk.f32.mxu0 %vm3757_vm2, %v3756_v2  ;;  %2948 = vmatprep.mubr.msk.f32.mxu1 %vm3757_vm2, %v3756_v2  ;;  %vm1331_vm3 = vcmask 1043456   ;;  %vm1327_vm4 = vcmask 31744   ;;  %v1405_v17 = vld [vmem:[#allocation16] sm:$0xf] }
 0x102   : > { %1062 = vst.msk [vmem:[#allocation2 + $0x8] sm:$0x3] %vm1061_vm1, %v3756_v2  ;;  %1568 = vst.msk [vmem:[#allocation3 + $0x8] sm:$0x3] %vm1061_vm1, %v3756_v2  ;;  %s1055_s11 = scalar_select %p1054_p0, %s3927_s10, 1  ;;  %vm1488_vm5 = vcmask 261120  }
 0x103   : > { %2061 = vst.msk [vmem:[#allocation4 + $0x8] sm:$0x3] %vm1061_vm1, %v3756_v2  ;;  %s4571_s23 = sld [smem:[#allocation45_spill]]  ;;  %v2840_v28 = vld [vmem:[#allocation10] ss:$0 sm:$0xff]  ;;  %v1986_v58 = vld [vmem:[%s4483_s18 + $0x18] sm:$0xff] }
 0x104   : > { %s2831_s9 = sshll.u32 %s1055_s11, 3  ;;  %v2841_v31 = vld [vmem:[#allocation12] ss:$0 sm:$0xff]  ;;  %v2842_v33 = vld [vmem:[#allocation15] ss:$0 sm:$0xff]  ;;  %v1985_v59 = vld [vmem:[%s4483_s18 + $0x10] sm:$0xff] }
 0x105   : > { %v2834_v0 = vld [vmem:[%s4570_s0 + $0x18] sm:$0xff]  ;;  %v1073_v1 = vld [vmem:[%s4570_s0 + $0x8] sm:$0xff]  ;;  %v2833_v3 = vld [vmem:[%s4570_s0 + $0x10] sm:$0xff]  ;;  %s1046_s6 = scalar_lea.vmem [#allocation29], %s4114_s20  ;;  %s4363_s14 = sshll.u32 %s3927_s10, 7 }
 0x106   : > { %2938 = vmatpush3.msra.mxu0 %v2834_v0  ;;  %2945 = vmatpush3.msra.mxu1 %v1073_v1  ;;  %v1072_v4 = vld [vmem:[%s4570_s0] sm:$0xff]  ;;  %v1065_v6 = vstv %s1064_s28  ;;  %v2838_v10 = vld [vmem:[%s4570_s0 + $0x28] sm:$0xff]  ;;  %s4573_s28 = sld [smem:[#allocation55_spill]]  ;;  %v1818_v56 = vld [vmem:[#allocation22] sm:$0xf]  ;;  %s2513_s13 = sshll.u32 %s1046_s6, 4  ;;  %s2514_s13 = int_to_ptr.vmem [resolvable:$true] %s2513_s13 }
 0x107   : > { %2939 = vmatprep.subr.mxu0 %v3756_v2  ;;  %2946 = vmatprep.subr.mxu1 %v3756_v2  ;;  %v1066_v7 = vmul.f32 %v1065_v6, %v1063_v5  ;;  %v1068_v8 = vstv %s2832_s2  ;;  %v2837_v14 = vld [vmem:[%s4570_s0 + $0x20] sm:$0xff]  ;;  %s4572_s2 = sld [smem:[#allocation54_spill]]  ;;  %v2845_v36 = vld [vmem:[#allocation18] ss:$0 sm:$0xff]  ;;  %v2856_v5 = vld [vmem:[#allocation19] ss:$0 sm:$0xff]  ;;  %s4377_s12 = scalar_lea.hbm %s4491_s26, %s4363_s14 }
 0x108   : > { %2940 = vmatpush3.msra.mxu0 %v2833_v3  ;;  %2947 = vmatpush3.msra.mxu1 %v1072_v4  ;;  %v1899_v54 = vld [vmem:[%s4481_s16] sm:$0xf]  ;;  %v1984_v60 = vld [vmem:[%s4483_s18 + $0x8] sm:$0xff]  ;;  %s3592_s0 = scalar_lea.vmem %s2514_s13, 128  ;;  %p4574_p2 = scmp.ne.s32.totalorder %s4550_s29, 0 }
 0x109   : > { %2951 = vmatprep.subr.mxu0 %v3756_v2  ;;  %2958 = vmatprep.subr.mxu1 %v3756_v2  ;;  %v1069_v9 = vadd.f32 %v1068_v8, %v1066_v7  ;;  %s1057_s1 = scalar_lea.vmem %s4571_s23, %s2831_s9  ;;  %s4505_s23 = scalar_lea.vmem [#allocation28], %s4114_s20  ;;  %v1983_v61 = vld [vmem:[%s4483_s18] sm:$0xff] }
 0x10a   : > { %v4201_v16 = vld [vmem:[%s1057_s1] sm:$0xff]  ;;  %s2481_s1 = sand.u32 1, %s3927_s10   ;;  %s4369_s9 = scalar_lea.hbm %s4492_s27, %s4363_s14 }
 0x10b   : > { %1070 = vst.msk [vmem:[#allocation2 + $0x1] sm:$0xff] %vm1059_vm0, %v1069_v9  ;;  %v2857_v9 = vld [vmem:[#allocation21] ss:$0 sm:$0xff]  ;;  %p3593_p4 = scmp.ne.s32.totalorder %s2514_s13, %s3592_s0  ;;  %s3758_s10 = smov [#allocation29]  }
 0x10c   : > { %v2850_v45 = vld [vmem:[%s4573_s28 + $0x18] sm:$0xff]  ;;  %v2854_v46 = vld [vmem:[%s4573_s28 + $0x28] sm:$0xff]  ;;  %v2849_v47 = vld [vmem:[%s4573_s28 + $0x10] sm:$0xff]  ;;  %s3596_s4 = sshll.u32 %s3758_s10, 4  ;;  %s3597_s4 = int_to_ptr.vmem [resolvable:$false] %s3596_s4 }
 0x10d   : > { %v1493_v18 = vld [vmem:[%s4572_s2 + $0x18] sm:$0xff]  ;;  %v1492_v19 = vld [vmem:[%s4572_s2 + $0x10] sm:$0xff]  ;;  %v1491_v20 = vld [vmem:[%s4572_s2 + $0x8] sm:$0xff]  ;;  %p3594_p7 = pnand %p3593_p4, %p4574_p2  ;;  %s3598_s11 = scalar_lea.vmem %s3597_s4, 256 }
 0x10e   : > { %v1490_v21 = vld [vmem:[%s4572_s2] sm:$0xff]  ;;  %v1572_v51 = vld [vmem:[%s4573_s28 + $0x8] sm:$0xff]  ;;  %p3599_p11 = scmp.lt.s32.totalorder %s2514_s13, %s3597_s4  ;;  %p3600_p12 = scmp.lt.s32.totalorder %s3598_s11, %s3592_s0 }
 0x10f   : > { %v2853_v48 = vld [vmem:[%s4573_s28 + $0x20] sm:$0xff]  ;;  %p3595_p10 = pneg %p3594_p7 }
 0x110   : > { %v1571_v55 = vld [vmem:[%s4573_s28] sm:$0xff]  ;;  %p3601_p13 = por %p3600_p12, %p3599_p11 }
 0x112   : > { %v1074_v11 = vld [vmem:[#allocation2 + $0x1] sm:$0xff]  ;;  %p3602_p1 = pnand %p3601_p13, %p3595_p10 }
 0x113   : > { %v1071_v12 = vld [vmem:[#allocation2] sm:$0xff]  ;;  %2942 = vmatmul.mubr.msk.f32.vlgmr.msra.gmra.mxu0 %vm1059_vm0, %v1074_v11 }
 0x114   : > { %2949 = vmatmul.mubr.msk.f32.vlgmr.msra.gmra.mxu1 %vm1059_vm0, %v1071_v12  ;;  %2952 = vmatpush3.msra.mxu0 %v2838_v10  ;;  %v1224_v15 = vld [vmem:[#allocation2 + $0x2] sm:$0xff]  ;;  %v2858_v10 = vld [vmem:[#allocation24] ss:$0 sm:$0xff] }
 0x115   : > { %2955 = vmatprep.mubr.msk.f32.mxu0 %vm3757_vm2, %v3756_v2  ;;  %2953 = vmatprep.subr.mxu0 %v3756_v2 }
 0x116   : > { %2959 = vmatpush3.msk.msra.mxu1 %vm1331_vm3, %v1319_v13  ;;  %2954 = vmatpush3.msra.mxu0 %v2837_v14 }
 0x117   : > { %2960 = vmatprep.mubr.msk.f32.mxu1 %vm3757_vm2, %v3756_v2  ;;  %2956 = vmatmul.mubr.msk.f32.vlgmr.msra.gmra.mxu0 %vm1059_vm0, %v1224_v15  ;;  %v2861_v15 = vld [vmem:[#allocation25] ss:$0 sm:$0xff] }
 0x118   : > { %2963 = vmatprep.subr.mxu0 %v3756_v2  ;;  %2961 = vmatmul.mubr.msk.f32.vlgmr.msra.gmra.mxu1 %vm1327_vm4, %v4201_v16 }
 0x119   : > { %2964 = vmatpush3.msk.msra.mxu0 %vm1331_vm3, %v1405_v17  ;;  %2965 = vmatprep.mubr.msk.f32.mxu0 %vm3757_vm2, %v3756_v2 }
 0x11a   : > { %2968 = vmatprep.subr.mxu1 %v3756_v2  ;;  %2976 = vmatprep.mubr.msk.f32.mxu1 %vm3757_vm2, %v3756_v2 }
 0x11b   : > { %2979 = vmatprep.subr.mxu0 %v3756_v2  ;;  %2966 = vmatmul.mubr.msk.f32.vlgmr.msra.gmra.mxu0 %vm1327_vm4, %v4201_v16 }
 0x11c   : > { %2983 = vmatprep.mubr.msk.f32.mxu0 %vm3757_vm2, %v3756_v2  ;;  %2969 = vmatpush3.msra.mxu1 %v1493_v18 }
 0x11d   : > { %2970 = vmatprep.subr.mxu1 %v3756_v2  ;;  %2980 = vmatpush3.msra.mxu0 %v2850_v45 }
 0x11e   : > { %2971 = vmatpush3.msra.mxu1 %v1492_v19  ;;  %2981 = vmatprep.subr.mxu0 %v3756_v2 }
 0x11f   : > { %2972 = vmatprep.subr.mxu1 %v3756_v2  ;;  %2982 = vmatpush3.msra.mxu0 %v2849_v47 }
 0x120   : > { %2973 = vmatpush3.msra.mxu1 %v1491_v20  ;;  %2986 = vmatprep.subr.mxu0 %v3756_v2 }
 0x121   : > { %2974 = vmatprep.subr.mxu1 %v3756_v2 }
 0x122   : > { %2975 = vmatpush3.msra.mxu1 %v1490_v21 }
 0x123   : > { %2993 = vmatprep.subr.mxu1 %v3756_v2 }
 0x1d3   : > { %v1147_v22 = vpop.f32.mrf.mxu0 }
 0x1d4   : > { %v1220_v23 = vpop.f32.mrf.mxu1 }
 0x1d5   : > { %v2943_v24 = vpop.f32.mrf.mxu0  ;;  %v1221_v26 = vadd.f32 %v1220_v23, %v1147_v22  ;;  %v2866_v23 = vld [vmem:[%s4484_s19 + $0x18] sm:$0xff] }
 0x1d6   : > { %v2950_v25 = vpop.f32.mrf.mxu1  ;;  %v2870_v24 = vld [vmem:[%s4484_s19 + $0x28] sm:$0xff] }
 0x1d7   : > { %v1297_v27 = vpop.f32.mrf.mxu0  ;;  %v2865_v25 = vld [vmem:[%s4484_s19 + $0x10] sm:$0xff] }
 0x1d8   : > { %v1301_v29 = vadd.f32 %v1297_v27, %v1221_v26  ;;  %v1401_v30 = vpop.f32.mrf.mxu1  ;;  %v2869_v26 = vld [vmem:[%s4484_s19 + $0x20] sm:$0xff] }
 0x1d9   : > { %v2957_v32 = vpop.f32.mrf.mxu0  ;;  %v1402_v39 = vadd.f32 %v2842_v33, %v1401_v30  ;;  %v2064_v33 = vld [vmem:[%s4484_s19] sm:$0xff] }
 0x1da   : > { %v1309_v34 = vmul.f32 %v2840_v28, %v1301_v29  ;;  %v2962_v35 = vpop.f32.mrf.mxu1  ;;  %v2065_v29 = vld [vmem:[%s4484_s19 + $0x8] sm:$0xff]  ;;  %v2392_v32 = vld [vmem:[%s4489_s24] sm:$0xf] }
 0x1db   : > { %v1482_v37 = vpop.f32.mrf.mxu0 }
 0x1dc   : > { %v1317_v38 = vadd.f32 %v2841_v31, %v1309_v34  ;;  %v1483_v42 = vadd.f32 %v2845_v36, %v1482_v37  ;;  %v2311_v34 = vld [vmem:[%s4487_s22] sm:$0xf] }
 0x1dd   : > { %v2967_v40 = vpop.f32.mrf.mxu0 }
 0x1de   : > { %v1318_v41 = vmax.f32 %v1317_v38, 0.0 }
 0x1e0   : > { %v1486_v43 = vmul.f32 %v1402_v39, %v1318_v41 }
 0x1e2   : > { %v1487_v44 = vadd.f32 %v1486_v43, %v1483_v42 }
 0x1e4   : > { %2977 = vmatmul.mubr.msk.f32.vlgmr.msra.gmra.mxu1 %vm1488_vm5, %v1487_v44  ;;  %1489 = vst.msk [vmem:[%s4505_s23] sm:$0xff] %vm1488_vm5, %v1487_v44  ;;  %s4379_s23 = scalar_lea.sflag [#allocation30], %s2481_s1 }
 0x1e5   : > { %2997 = vmatprep.mubr.msk.f32.mxu1 %vm3757_vm2, %v3756_v2  ;;  %2994 = vmatpush3.msra.mxu1 %v2854_v46 }
 0x1e6   : > { %2995 = vmatprep.subr.mxu1 %v3756_v2 }
 0x1e7   : > { %2996 = vmatpush3.msra.mxu1 %v2853_v48 }
 0x1e8   : > { %3005 = vmatprep.subr.mxu1 %v3756_v2 }
 0x2a4   : > { %v1563_v49 = vpop.f32.mrf.mxu1 }
 0x2a5   : > { %1569 = vst.msk [vmem:[#allocation3 + $0x1] sm:$0xff] %vm1059_vm0, %v1563_v49 }
 0x2a6   : > { %v2978_v50 = vpop.f32.mrf.mxu1 }
 0x2ac   : > { %v1573_v52 = vld [vmem:[#allocation3 + $0x1] sm:$0xff] }
 0x2ad   : > { %v1723_v53 = vld [vmem:[#allocation3 + $0x2] sm:$0xff]  ;;  %2984 = vmatmul.mubr.msk.f32.vlgmr.msra.gmra.mxu0 %vm1059_vm0, %v1573_v52 }
 0x2ae   : > { %2998 = vmatmul.mubr.msk.f32.vlgmr.msra.gmra.mxu1 %vm1059_vm0, %v1723_v53  ;;  %2987 = vmatpush3.msra.mxu0 %v1572_v51  ;;  %v1570_v57 = vld [vmem:[#allocation3] sm:$0xff] }
 0x2af   : > { %2990 = vmatprep.mubr.msk.f32.mxu0 %vm3757_vm2, %v3756_v2  ;;  %2988 = vmatprep.subr.mxu0 %v3756_v2 }
 0x2b0   : > { %3006 = vmatpush3.msk.msra.mxu1 %vm1331_vm3, %v1899_v54  ;;  %2989 = vmatpush3.msra.mxu0 %v1571_v55 }
 0x2b1   : > { %3007 = vmatprep.mubr.msk.f32.mxu1 %vm3757_vm2, %v3756_v2  ;;  %2991 = vmatmul.mubr.msk.f32.vlgmr.msra.gmra.mxu0 %vm1059_vm0, %v1570_v57 }
 0x2b2   : > { %3000 = vmatprep.subr.mxu0 %v3756_v2  ;;  %3002 = vmatprep.mubr.msk.f32.mxu0 %vm3757_vm2, %v3756_v2 }
 0x2b3   : > { %3001 = vmatpush3.msk.msra.mxu0 %vm1331_vm3, %v1818_v56  ;;  %3008 = vmatmul.mubr.msk.f32.vlgmr.msra.gmra.mxu1 %vm1327_vm4, %v4201_v16 }
 0x2b4   : > { %3010 = vmatprep.subr.mxu0 %v3756_v2  ;;  %3021 = vmatprep.subr.mxu1 %v3756_v2 }
 0x2b5   : > { %3025 = vmatprep.mubr.msk.f32.mxu1 %vm3757_vm2, %v3756_v2  ;;  %3003 = vmatmul.mubr.msk.f32.vlgmr.msra.gmra.mxu0 %vm1327_vm4, %v4201_v16 }
 0x2b6   : > { %3018 = vmatprep.mubr.msk.f32.mxu0 %vm3757_vm2, %v3756_v2  ;;  %3011 = vmatpush3.msra.mxu0 %v1986_v58 }
 0x2b7   : > { %3012 = vmatprep.subr.mxu0 %v3756_v2  ;;  %3022 = vmatpush3.msra.mxu1 %v2866_v23 }
 0x2b8   : > { %3013 = vmatpush3.msra.mxu0 %v1985_v59  ;;  %3023 = vmatprep.subr.mxu1 %v3756_v2 }
 0x2b9   : > { %3014 = vmatprep.subr.mxu0 %v3756_v2  ;;  %3024 = vmatpush3.msra.mxu1 %v2865_v25 }
 0x2ba   : > { %3015 = vmatpush3.msra.mxu0 %v1984_v60  ;;  %3028 = vmatprep.subr.mxu1 %v3756_v2 }
 0x2bb   : > { %3016 = vmatprep.subr.mxu0 %v3756_v2 }
 0x2bc   : > { %3017 = vmatpush3.msra.mxu0 %v1983_v61 }
 0x2bd   : > { %3035 = vmatprep.subr.mxu0 %v3756_v2 }
 0x36d   : > { %v1646_v62 = vpop.f32.mrf.mxu0 }
 0x36e   : > { %v1796_v63 = vpop.f32.mrf.mxu1 }
 0x36f   : > { %v2985_v0 = vpop.f32.mrf.mxu0 }
 0x370   : > { %v2999_v1 = vpop.f32.mrf.mxu1 }
 0x371   : > { %v1719_v3 = vpop.f32.mrf.mxu0 }
 0x372   : > { %v1720_v4 = vadd.f32 %v1719_v3, %v1646_v62 }
 0x373   : > { %v2992_v6 = vpop.f32.mrf.mxu0  ;;  %v1976_v7 = vpop.f32.mrf.mxu1 }
 0x374   : > { %v1800_v8 = vadd.f32 %v1796_v63, %v1720_v4  ;;  %v1977_v20 = vadd.f32 %v2861_v15, %v1976_v7 }
 0x375   : > { %v1895_v11 = vpop.f32.mrf.mxu0  ;;  %v3009_v12 = vpop.f32.mrf.mxu1 }
 0x376   : > { %v1808_v13 = vmul.f32 %v2856_v5, %v1800_v8  ;;  %v1896_v18 = vadd.f32 %v2858_v10, %v1895_v11 }
 0x377   : > { %v3004_v14 = vpop.f32.mrf.mxu0 }
 0x378   : > { %v1816_v17 = vadd.f32 %v2857_v9, %v1808_v13 }
 0x37a   : > { %v1817_v19 = vmax.f32 %v1816_v17, 0.0 }
 0x37c   : > { %v1980_v21 = vmul.f32 %v1896_v18, %v1817_v19 }
 0x37e   : > { %v1981_v22 = vadd.f32 %v1980_v21, %v1977_v20 }
 0x380   : > { %3019 = vmatmul.mubr.msk.f32.vlgmr.msra.gmra.mxu0 %vm1488_vm5, %v1981_v22  ;;  %1982 = vst.msk [vmem:[%s1046_s6] sm:$0xff] %vm1488_vm5, %v1981_v22 }
 0x381   : > { %3039 = vmatprep.mubr.msk.f32.mxu0 %vm3757_vm2, %v3756_v2  ;;  %3036 = vmatpush3.msra.mxu0 %v2870_v24 }
 0x382   : > { %3037 = vmatprep.subr.mxu0 %v3756_v2 }
 0x383   : > { %3038 = vmatpush3.msra.mxu0 %v2869_v26 }
 0x384   : > { %3047 = vmatprep.subr.mxu0 %v3756_v2 }
 0x440   : > { %v2056_v27 = vpop.f32.mrf.mxu0 }
 0x441   : > { %2062 = vst.msk [vmem:[#allocation4 + $0x1] sm:$0xff] %vm1059_vm0, %v2056_v27 }
 0x442   : > { %v3020_v28 = vpop.f32.mrf.mxu0 }
 0x448   : > { %v2066_v30 = vld [vmem:[#allocation4 + $0x1] sm:$0xff] }
 0x449   : > { %v2216_v31 = vld [vmem:[#allocation4 + $0x2] sm:$0xff]  ;;  %3026 = vmatmul.mubr.msk.f32.vlgmr.msra.gmra.mxu1 %vm1059_vm0, %v2066_v30 }
 0x44a   : > { %3040 = vmatmul.mubr.msk.f32.vlgmr.msra.gmra.mxu0 %vm1059_vm0, %v2216_v31  ;;  %3029 = vmatpush3.msra.mxu1 %v2065_v29  ;;  %v2063_v35 = vld [vmem:[#allocation4] sm:$0xff] }
 0x44b   : > { %3032 = vmatprep.mubr.msk.f32.mxu1 %vm3757_vm2, %v3756_v2  ;;  %3030 = vmatprep.subr.mxu1 %v3756_v2 }
 0x44c   : > { %3048 = vmatpush3.msk.msra.mxu0 %vm1331_vm3, %v2392_v32  ;;  %3031 = vmatpush3.msra.mxu1 %v2064_v33 }
 0x44d   : > { %3049 = vmatprep.mubr.msk.f32.mxu0 %vm3757_vm2, %v3756_v2  ;;  %3033 = vmatmul.mubr.msk.f32.vlgmr.msra.gmra.mxu1 %vm1059_vm0, %v2063_v35 }
 0x44e   : > { %3042 = vmatprep.subr.mxu1 %v3756_v2  ;;  %3044 = vmatprep.mubr.msk.f32.mxu1 %vm3757_vm2, %v3756_v2 }
 0x44f   : > { %3043 = vmatpush3.msk.msra.mxu1 %vm1331_vm3, %v2311_v34  ;;  %3050 = vmatmul.mubr.msk.f32.vlgmr.msra.gmra.mxu0 %vm1327_vm4, %v4201_v16 }
 0x451   : > { %3045 = vmatmul.mubr.msk.f32.vlgmr.msra.gmra.mxu1 %vm1327_vm4, %v4201_v16 }
 0x452   : > { %3605 = shalt.err (!%p3602_p1)
}
 0x453   : > { %s3606_s6 = scalar_lea.hbm %s4369_s9, 128  ;;  %s3610_s25 = scalar_lea.hbm %s4492_s27, 256 }
 0x454   : > { %p3607_p3 = scmp.ne.s32.totalorder %s4369_s9, %s3606_s6  ;;  %p3611_p9 = scmp.lt.s32.totalorder %s4369_s9, %s4492_s27 }
 0x455   : > { %p3612_p6 = scmp.lt.s32.totalorder %s3610_s25, %s3606_s6 }
 0x456   : > { %p3608_p5 = pnand %p3607_p3, %p4574_p2 }
 0x457   : > { %p3613_p0 = por %p3612_p6, %p3611_p9 }
 0x458   : > { %p3609_p8 = pneg %p3608_p5 }
 0x45a   : > { %p3614_p4 = pnand %p3613_p0, %p3609_p8 }
 0x45c   : > { %3617 = shalt.err (!%p3614_p4)
}
 0x45d   : > { %3107 = dma.vmem_to_hbm [thread:$0]  (%p4574_p2), %s2514_s13, 128, %s4369_s9, %s4379_s23  }
 0x45e   : > { %s4575_s0 = scalar_lea.vmem [#allocation28], %s4114_s20  ;;  %s2477_s11 = scalar_lea.sflag [#allocation7], %s4111_s17 }
 0x45f   : > { %s2500_s4 = sshll.u32 %s4575_s0, 4  ;;  %s3759_s2 = smov [#allocation28]   ;;  %s2501_s4 = int_to_ptr.vmem [resolvable:$true] %s2500_s4 }
 0x460   : > { %s3618_s1 = scalar_lea.vmem %s2501_s4, 128  ;;  %s3622_s6 = sshll.u32 %s3759_s2, 4  ;;  %s3623_s6 = int_to_ptr.vmem [resolvable:$false] %s3622_s6 }
 0x461   : > { %p3619_p7 = scmp.ne.s32.totalorder %s2501_s4, %s3618_s1  ;;  %s3624_s15 = scalar_lea.vmem %s3623_s6, 256 }
 0x462   : > { %p3625_p12 = scmp.lt.s32.totalorder %s2501_s4, %s3623_s6  ;;  %p3626_p13 = scmp.lt.s32.totalorder %s3624_s15, %s3618_s1 }
 0x463   : > { %p3620_p10 = pnand %p3619_p7, %p4574_p2 }
 0x464   : > { %p3627_p1 = por %p3626_p13, %p3625_p12 }
 0x465   : > { %p3621_p11 = pneg %p3620_p10 }
 0x467   : > { %p3628_p3 = pnand %p3627_p1, %p3621_p11 }
 0x469   : > { %3631 = shalt.err (!%p3628_p3)
}
 0x46a   : > { %s3632_s9 = scalar_lea.hbm %s4377_s12, 128  ;;  %s3636_s25 = scalar_lea.hbm %s4491_s26, 256 }
 0x46b   : > { %p3633_p5 = scmp.ne.s32.totalorder %s4377_s12, %s3632_s9  ;;  %p3637_p6 = scmp.lt.s32.totalorder %s4377_s12, %s4491_s26 }
 0x46c   : > { %p3638_p0 = scmp.lt.s32.totalorder %s3636_s25, %s3632_s9 }
 0x46d   : > { %p3634_p8 = pnand %p3633_p5, %p4574_p2 }
 0x46e   : > { %p3639_p4 = por %p3638_p0, %p3637_p6 }
 0x46f   : > { %p3635_p9 = pneg %p3634_p8 }
 0x471   : > { %p3640_p7 = pnand %p3639_p4, %p3635_p9 }
 0x473   : > { %3643 = shalt.err (!%p3640_p7)
}
 0x474   : > { %3106 = dma.vmem_to_hbm [thread:$0]  (%p4574_p2), %s2501_s4, 128, %s4377_s12, %s2477_s11   ;;  %v2872_v40 = vld [vmem:[#allocation27] ss:$0 sm:$0xff] }
 0x475   : > { %s4576_s6 = sld [smem:[#allocation62_spill]]  ;;  %s1053_s13 = scalar_lea.vmem [#allocation31], %s4114_s20 }
 0x476   : > { %s4577_s17 = sld [smem:[#allocation63_spill]]  ;;  %s2526_s25 = sshll.u32 %s1053_s13, 4  ;;  %s2527_s25 = int_to_ptr.vmem [resolvable:$true] %s2526_s25 }
 0x477   : > { %s4578_s11 = sld [smem:[#allocation64_spill]]  ;;  %s3760_s15 = smov [#allocation31]  }
 0x478   : > { %s4579_s1 = sld [smem:[#allocation65_spill]]  ;;  %s3648_s9 = sshll.u32 %s3760_s15, 4  ;;  %s3649_s9 = int_to_ptr.vmem [resolvable:$false] %s3648_s9 }
 0x479   : > { %p3651_p13 = scmp.lt.s32.totalorder %s2527_s25, %s3649_s9 }
 0x47b   : > { %v2873_v44 = vld [vmem:[%s4576_s6] ss:$0 sm:$0xff]  ;;  %s3644_s6 = scalar_lea.vmem %s2527_s25, 128 }
 0x47c   : > { %v2874_v45 = vld [vmem:[%s4577_s17] ss:$0 sm:$0xff]  ;;  %p3645_p10 = scmp.ne.s32.totalorder %s2527_s25, %s3644_s6  ;;  %s3650_s17 = scalar_lea.vmem %s3649_s9, 256 }
 0x47d   : > { %v2877_v50 = vld [vmem:[%s4578_s11] ss:$0 sm:$0xff]  ;;  %p3652_p1 = scmp.lt.s32.totalorder %s3650_s17, %s3644_s6 }
 0x47e   : > { %s2524_s2 = scalar_lea.hbm %s4579_s1, %s4363_s14  ;;  %p3646_p11 = pnand %p3645_p10, %p4574_p2 }
 0x47f   : > { %p3653_p3 = por %p3652_p1, %p3651_p13 }
 0x480   : > { %p3647_p12 = pneg %p3646_p11 }
 0x482   : > { %p3654_p5 = pnand %p3653_p3, %p3647_p12 }
 0x509   : > { %v2139_v2 = vpop.f32.mrf.mxu1 }
 0x50a   : > { %v2289_v16 = vpop.f32.mrf.mxu0 }
 0x50b   : > { %v3027_v36 = vpop.f32.mrf.mxu1 }
 0x50c   : > { %v3041_v37 = vpop.f32.mrf.mxu0 }
 0x50d   : > { %v2212_v38 = vpop.f32.mrf.mxu1 }
 0x50e   : > { %v2213_v39 = vadd.f32 %v2212_v38, %v2139_v2 }
 0x50f   : > { %v3034_v41 = vpop.f32.mrf.mxu1  ;;  %v2469_v42 = vpop.f32.mrf.mxu0 }
 0x510   : > { %v2293_v43 = vadd.f32 %v2289_v16, %v2213_v39  ;;  %v2470_v54 = vadd.f32 %v2877_v50, %v2469_v42 }
 0x511   : > { %v2388_v46 = vpop.f32.mrf.mxu1  ;;  %v3051_v47 = vpop.f32.mrf.mxu0 }
 0x512   : > { %v2301_v48 = vmul.f32 %v2872_v40, %v2293_v43  ;;  %v2389_v52 = vadd.f32 %v2874_v45, %v2388_v46 }
 0x513   : > { %v3046_v49 = vpop.f32.mrf.mxu1 }
 0x514   : > { %v2309_v51 = vadd.f32 %v2873_v44, %v2301_v48 }
 0x516   : > { %v2310_v53 = vmax.f32 %v2309_v51, 0.0 }
 0x518   : > { %v2473_v55 = vmul.f32 %v2389_v52, %v2310_v53 }
 0x51a   : > { %v2474_v56 = vadd.f32 %v2473_v55, %v2470_v54 }
 0x51c   : > { %2475 = vst.msk [vmem:[%s1053_s13] sm:$0xff] %vm1488_vm5, %v2474_v56 }
 0x51d   : > { %3657 = shalt.err (!%p3654_p5)
}
 0x51e   : > { %s3658_s20 = scalar_lea.hbm %s2524_s2, 128  ;;  %s3662_s4 = scalar_lea.hbm %s4579_s1, 256 }
 0x51f   : > { %p3659_p8 = scmp.ne.s32.totalorder %s2524_s2, %s3658_s20  ;;  %p3663_p0 = scmp.lt.s32.totalorder %s2524_s2, %s4579_s1 }
 0x520   : > { %p3664_p4 = scmp.lt.s32.totalorder %s3662_s4, %s3658_s20 }
 0x521   : > { %p3660_p9 = pnand %p3659_p8, %p4574_p2 }
 0x522   : > { %p3665_p7 = por %p3664_p4, %p3663_p0 }
 0x523   : > { %p3661_p6 = pneg %p3660_p9 }
 0x525   : > { %p3666_p10 = pnand %p3665_p7, %p3661_p6 }
 0x527   : > { %3669 = shalt.err (!%p3666_p10)
}
 0x528   : > { %3108 = dma.vmem_to_hbm [thread:$0]  (%p4574_p2), %s2527_s25, 128, %s2524_s2, %s4379_s23  }
 0x529 PF: > { %s2538_s10 = sand.u32 1, %s3728_s8   ;;  %p4580_p11 = scmp.ne.s32.totalorder %s4551_s7, 0 }
 0x52a   : > { %p4581_p12 = scmp.ge.s32.totalorder %s3740_s30, 2  ;;  %s2539_s0 = scalar_lea.sflag [#allocation7], %s2538_s10 }
 0x52c   : > { %p3157_p13 = pnand %p4581_p12, %p4580_p11 }
 0x52e   : > { %p3158_p1 = pneg %p3157_p13 }
 0x530   : > { %3719 = dma.done.wait (%p3158_p1), %s2539_s0, 128  }
 0x531   : > { %3721 = vsyncadd (%p3158_p1), %s2539_s0, 4294967168  ;;  %s4582_s6 = sadd.s32 4294967294, %s3740_s30  }
 0x532   : > { %s2547_s15 = sand.u32 1, %s4582_s6  }
 0x533   : > { %s2548_s9 = scalar_lea.sflag [#allocation30], %s2547_s15 }
 0x534   : > { %3723 = dma.done.wait (%p3158_p1), %s2548_s9, 256  }
 0x535   : > { %3725 = vsyncadd (%p3158_p1), %s2548_s9, 4294967040  ;;  %s4583_s29 = sld [smem:[#allocation42_spill]]  ;;  %p52_p2 = scmp.ge.s32.totalorder %s4052_s3, 4  }
 0x536   : > { %s4584_s9 = sld [smem:[#allocation43_spill]]  ;;  %s4585_s8 = smov %s3732_s5 }
 0x537   : > { %s4587_s30 = smov %s4052_s3  ;;  %54 = sbr.rel (!%p52_p2) target bundleno = 37 (0x25), region = 263 }
 0x53b   : > { %s4586_s5 = smov %s4583_s29 }
 0x53c   :  { %2562 = vsyncpa [#allocation6], 1 }
 0x53d   :  { %2564 = vsyncpa [#allocation6 + $0x1], 1 }
 0x53e   :  { %2565 = vsyncpa [#allocation11], 1 }
 0x53f   :  { %2566 = vsyncpa [#allocation14], 1 }
 0x540   :  { %2567 = vsyncpa [#allocation17], 1 }
 0x541   :  { %2568 = vsyncpa [#allocation20], 1 }
 0x542   :  { %2569 = vsyncpa [#allocation23], 1 }
 0x543   :  { %2570 = vsyncpa [#allocation26], 1 }
 0x544   :  { %2571 = vsyncpa [#allocation7], 1 }
 0x545   :  { %2573 = vsyncpa [#allocation7 + $0x1], 1 }
 0x546   :  { %2574 = vsyncpa [#allocation30], 1 }
 0x547   :  { %2576 = vsyncpa [#allocation30 + $0x1], 1 }
 0x548   :  { %2577 = vsyncpa [#allocation8], 1 }
 0x549   :  { %2579 = vsyncpa [#allocation8 + $0x1], 1 }

</bundles_post_ra>
